<compile_context>
chip_gen: v7x
topology: tpu7x:2x2x1
jax: 0.10.0
libtpu: 0.0.40
codegen_flags: <defaults>
</compile_context>

<pallas_src>
import jax
import jax.numpy as jnp
from jax import lax
from jax.experimental import pallas as pl
from jax.experimental.pallas import tpu as pltpu

EPS = 1e-5
LANE = 128
SUBLANE = 8


def _round_up(n, m):
    return (n + m - 1) // m * m


# --------------------------------------------------------------------------- #
# Fused TCN kernel
# --------------------------------------------------------------------------- #
def make_tcn_kernel(layer_meta, Bt, Lp, C, left_pad):
    """layer_meta: tuple of (K, dilation, has_downsample) per TemporalBlock."""
    n_w = sum(3 if has_ds else 2 for (_, _, has_ds) in layer_meta)
    n_layers = len(layer_meta)

    def kernel(x_ref, vec_ref, *refs):
        w_refs = refs[:n_w]
        o_ref = refs[n_w]
        act_ref = refs[n_w + 1]
        tmp_ref = refs[n_w + 2]
        act_dt = act_ref.dtype

        # Zero only the causal pad rows.  Invariant: rows [0, left_pad) are
        # never written afterwards; every row >= left_pad is fully overwritten
        # before it is read.  (Zeroed every grid step so it is also correct
        # under megacore sharding of the parallel batch axis.)
        if left_pad > 0:
            zpad = jnp.zeros((Bt, left_pad, C), act_dt)
            act_ref[:, :left_pad, :] = zpad
            tmp_ref[:, :left_pad, :] = zpad
        act_ref[:, left_pad:, :] = x_ref[...]

        def dilated_conv(src_ref, w_ref, K, d):
            # K causal taps as shifted static slices of the padded scratch;
            # K small (C, C) MXU matmuls accumulated in f32 (no concat temp).
            acc = None
            for k in range(K):
                start = left_pad - (K - 1 - k) * d
                xk = src_ref[:, start:start + Lp, :].reshape(Bt * Lp, C)
                part = jnp.dot(xk, w_ref[k * C:(k + 1) * C, :],
                               preferred_element_type=jnp.float32)
                acc = part if acc is None else acc + part
            return acc

        wi = 0
        vi = 0
        for li, (K, d, has_ds) in enumerate(layer_meta):
            w1, w2 = w_refs[wi], w_refs[wi + 1]
            wi += 2
            wd = None
            if has_ds:
                wd = w_refs[wi]
                wi += 1
            s1 = vec_ref[vi + 0:vi + 1, :]
            b1 = vec_ref[vi + 1:vi + 2, :]
            s2 = vec_ref[vi + 2:vi + 3, :]
            b2 = vec_ref[vi + 3:vi + 4, :]
            vi += 4
            if has_ds:
                bd = vec_ref[vi:vi + 1, :]
                vi += 1

            # conv1 -> folded BN -> ReLU (dropout = identity in eval mode)
            h = dilated_conv(act_ref, w1, K, d)
            h = jnp.maximum(h * s1 + b1, 0.0)
            tmp_ref[:, left_pad:, :] = h.reshape(Bt, Lp, C).astype(act_dt)

            # conv2 -> folded BN -> ReLU
            h = dilated_conv(tmp_ref, w2, K, d)
            h = jnp.maximum(h * s2 + b2, 0.0)

            # residual (1x1 conv if channel counts differ) + ReLU
            x_in = act_ref[:, left_pad:, :].reshape(Bt * Lp, C)
            if has_ds:
                res = jnp.dot(x_in, wd[...],
                              preferred_element_type=jnp.float32) + bd
            else:
                res = x_in.astype(jnp.float32)
            y = jnp.maximum(h + res, 0.0)
            if li == n_layers - 1:
                # Last block writes straight to the output (no extra copy).
                o_ref[...] = y.reshape(Bt, Lp, C).astype(o_ref.dtype)
            else:
                act_ref[:, left_pad:, :] = y.reshape(Bt, Lp, C).astype(act_dt)

    return kernel


# --------------------------------------------------------------------------- #
# Wrapper
# --------------------------------------------------------------------------- #
def tcn_forward_pallas(x, weights, vec, meta, *, compute_dtype=jnp.bfloat16,
                       batch_tile=None):
    """x: (B, L, num_inputs) f32.  weights/vec/meta from pack_params / init_raw_tcn."""
    B, L, _ = x.shape
    C = vec.shape[-1]                                  # lane-padded channel width
    Lp = _round_up(max(L, SUBLANE), SUBLANE)
    maxpad = max((K - 1) * d for (K, d, _, _) in meta)
    left_pad = _round_up(maxpad, SUBLANE) if maxpad > 0 else 0
    act_bytes = jnp.dtype(compute_dtype).itemsize

    # Generation-aware VMEM budget (128 MiB v5e/v6e, 64 MiB v7x).
    try:
        vmem_cap = int(pltpu.get_tpu_info().vmem_capacity_bytes)
    except Exception:
        vmem_cap = 64 << 20
    vmem_limit = max(32 << 20, min(vmem_cap * 3 // 4, 100 << 20))

    # Pre-cast weights to the MXU operand dtype once (halves weight DMA, no
    # per-step in-kernel casts).  Scale/shift vectors stay f32.
    w_cast = [w.astype(compute_dtype) for w in weights]
    weight_bytes = sum(w.size * act_bytes for w in w_cast) + vec.size * 4

    if batch_tile is None:
        per_seq = (2 * (left_pad + Lp) * C * act_bytes   # two scratch buffers
                   + 2 * Lp * C * act_bytes              # double-buffered input
                   + 2 * Lp * C * 4)                     # double-buffered output
        budget = vmem_limit - 2 * weight_bytes - (4 << 20)
        bt = max(1, min(B, budget // max(per_seq, 1)))
        # Keep the matmul M = bt*Lp a multiple of 256 (v6e/v7x MXU width).
        if Lp < 256 and bt * Lp > 512 and 256 % Lp == 0:
            mult = 256 // Lp
            bt = max(mult, (bt // mult) * mult)
        # Cap batch padding waste (padded rows are pure wasted MXU/DMA work).
        while bt > 1 and 2 * (_round_up(B, bt) - B) >= bt:
            bt -= 1
        # Megacore (v7x): keep at least one grid step per TensorCore.
        n_tc = getattr(jax.devices()[0], "num_cores", 1) or 1
        while n_tc > 1 and bt > 1 and pl.cdiv(B, bt) < n_tc:
            bt = pl.cdiv(bt, 2)
        batch_tile = bt
    Bt = int(batch_tile)
    Bp = _round_up(B, Bt)

    # Pad batch, time (sublane multiple) and channels (lane width 128); store
    # the input in the compute dtype so the first scratch write is a plain copy.
    xp = jnp.zeros((Bp, Lp, C), compute_dtype).at[:B, :L, :x.shape[2]].set(
        x.astype(compute_dtype))

    layer_meta = tuple((K, d, cin != cout) for (K, d, cin, cout) in meta)
    kernel = make_tcn_kernel(layer_meta, Bt, Lp, C, left_pad)

    in_specs = [pl.BlockSpec((Bt, Lp, C), lambda b: (b, 0, 0)),
                pl.BlockSpec(vec.shape, lambda b: (0, 0))]
    in_specs += [pl.BlockSpec(w.shape, lambda b: (0, 0)) for w in w_cast]

    out = pl.pallas_call(
        kernel,
        out_shape=jax.ShapeDtypeStruct((Bp, Lp, C), jnp.float32),
        grid=(Bp // Bt,),
        in_specs=in_specs,
        out_specs=pl.BlockSpec((Bt, Lp, C), lambda b: (b, 0, 0)),
        scratch_shapes=[pltpu.VMEM((Bt, left_pad + Lp, C), compute_dtype),
                        pltpu.VMEM((Bt, left_pad + Lp, C), compute_dtype)],
        compiler_params=pltpu.CompilerParams(
            dimension_semantics=("parallel",),
            vmem_limit_bytes=int(vmem_limit)),
    )(xp, vec, *w_cast)

    cout_last = meta[-1][3]
    return out[:B, :L, :cout_last]


# --------------------------------------------------------------------------- #
# Deterministic parameter init (shapes match the PyTorch __init__) + packing
# --------------------------------------------------------------------------- #
def _fold_bn(conv_bias, gamma, beta, mean, var):
    a = gamma / jnp.sqrt(var + EPS)
    return a, a * (conv_bias - mean) + beta


def init_raw_block(key, cin, cout, K):
    ks = jax.random.split(key, 14)
    p = dict(
        w1=0.3 * jax.random.normal(ks[0], (cout, cin, K), jnp.float32),   # (O,I,K)
        b1=0.1 * jax.random.normal(ks[1], (cout,), jnp.float32),
        g1=1.0 + 0.1 * jax.random.normal(ks[2], (cout,), jnp.float32),
        be1=0.1 * jax.random.normal(ks[3], (cout,), jnp.float32),
        m1=0.1 * jax.random.normal(ks[4], (cout,), jnp.float32),
        v1=0.5 + jax.random.uniform(ks[5], (cout,), jnp.float32),
        w2=0.3 * jax.random.normal(ks[6], (cout, cout, K), jnp.float32),
        b2=0.1 * jax.random.normal(ks[7], (cout,), jnp.float32),
        g2=1.0 + 0.1 * jax.random.normal(ks[8], (cout,), jnp.float32),
        be2=0.1 * jax.random.normal(ks[9], (cout,), jnp.float32),
        m2=0.1 * jax.random.normal(ks[10], (cout,), jnp.float32),
        v2=0.5 + jax.random.uniform(ks[11], (cout,), jnp.float32),
    )
    if cin != cout:
        p["wd"] = 0.3 * jax.random.normal(ks[12], (cout, cin, 1), jnp.float32)
        p["bd"] = 0.1 * jax.random.normal(ks[13], (cout,), jnp.float32)
    return p


def init_raw_tcn(key, num_inputs, num_channels, K):
    raw, meta = [], []
    cin = num_inputs
    keys = jax.random.split(key, len(num_channels))
    for i, cout in enumerate(num_channels):
        raw.append(init_raw_block(keys[i], cin, cout, K))
        meta.append((K, 2 ** i, cin, cout))           # (kernel, dilation, cin, cout)
        cin = cout
    return raw, meta


def pack_params(raw, meta, lane=LANE):
    """Fold BN, zero-pad channels to the lane width, pack the K conv taps as
    (K*C, C) tap-major weights and stack all per-layer (C,) scale/shift/bias
    vectors into one (n_vecs, C) array."""
    C = _round_up(max([meta[0][2]] + [m[3] for m in meta]), lane)

    def pack_w(w_t, ci, co):                          # torch (O, I, K) -> (K*C, C)
        K = w_t.shape[2]
        w = jnp.zeros((K, C, C), jnp.float32)
        w = w.at[:, :ci, :co].set(jnp.transpose(w_t, (2, 1, 0)))
        return w.reshape(K * C, C)

    def pack_vec(v, co):
        return jnp.zeros((C,), jnp.float32).at[:co].set(v)

    weights, vec_rows = [], []
    for p, (K, d, cin, cout) in zip(raw, meta):
        s1, b1 = _fold_bn(p["b1"], p["g1"], p["be1"], p["m1"], p["v1"])
        s2, b2 = _fold_bn(p["b2"], p["g2"], p["be2"], p["m2"], p["v2"])
        weights.append(pack_w(p["w1"], cin, cout))
        weights.append(pack_w(p["w2"], cout, cout))
        vec_rows += [pack_vec(s1, cout), pack_vec(b1, cout),
                     pack_vec(s2, cout), pack_vec(b2, cout)]
        if cin != cout:
            weights.append(jnp.zeros((C, C), jnp.float32).at[:cin, :cout].set(
                p["wd"][:, :, 0].T))
            vec_rows.append(pack_vec(p["bd"], cout))
    vec = jnp.stack(vec_rows, axis=0)
    return weights, vec, C


# --------------------------------------------------------------------------- #
# Pure-JAX reference (lax.conv_general_dilated) for a correctness check
# --------------------------------------------------------------------------- #
def ref_tcn(x, raw, meta):
    h = x
    for p, (K, d, cin, cout) in zip(raw, meta):
        s1, b1 = _fold_bn(p["b1"], p["g1"], p["be1"], p["m1"], p["v1"])
        s2, b2 = _fold_bn(p["b2"], p["g2"], p["be2"], p["m2"], p["v2"])
        h_ncl = jnp.transpose(h, (0, 2, 1))
        c1 = lax.conv_general_dilated(h_ncl, p["w1"], (1,), [((K - 1) * d, 0)],
                                      rhs_dilation=(d,),
                                      dimension_numbers=("NCH", "OIH", "NCH"))
        a1 = jnp.maximum(c1 * s1[None, :, None] + b1[None, :, None], 0.0)
        c2 = lax.conv_general_dilated(a1, p["w2"], (1,), [((K - 1) * d, 0)],
                                      rhs_dilation=(d,),
                                      dimension_numbers=("NCH", "OIH", "NCH"))
        a2 = jnp.maximum(c2 * s2[None, :, None] + b2[None, :, None], 0.0)
        if cin != cout:
            res = jnp.einsum("bcl,oc->bol", h_ncl, p["wd"][:, :, 0]) \
                + p["bd"][None, :, None]
        else:
            res = h_ncl
        h = jnp.transpose(jnp.maximum(a2 + res, 0.0), (0, 2, 1))
    return h


# --------------------------------------------------------------------------- #
if __name__ == "__main__":
    B, L = 2, 16
    num_inputs = 4
    num_channels = [8, 8]   # block 0 uses the 1x1 downsample (4->8); block 1 doesn't
    kernel_size = 2

    root = jax.random.PRNGKey(0)
    kx, kp = jax.random.split(root)
    x = jax.random.normal(kx, (B, L, num_inputs), jnp.float32)

    raw, meta = init_raw_tcn(kp, num_inputs, num_channels, kernel_size)
    weights, vec, _C = pack_params(raw, meta)

    ref = jax.block_until_ready(ref_tcn(x, raw, meta))

    # f32 path (exact vs reference)
    out_f32 = jax.block_until_ready(
        tcn_forward_pallas(x, weights, vec, meta, compute_dtype=jnp.float32))
    assert out_f32.shape == (B, L, num_channels[-1])
    assert jnp.allclose(out_f32, ref, rtol=1e-3, atol=1e-3), (
        f"f32 max abs err {float(jnp.max(jnp.abs(out_f32 - ref)))}")

    # Default path: bf16 MXU operands + bf16 activation scratch, f32 accumulation.
    out_bf16 = jax.block_until_ready(tcn_forward_pallas(x, weights, vec, meta))
    assert out_bf16.shape == (B, L, num_channels[-1])
    assert float(jnp.max(jnp.abs(out_bf16 - ref))) < 0.25, "bf16 path diverged"

    print("KERNEL_OK")
</pallas_src>

<mosaic_0001>
module attributes {stable_mosaic.version = 11 : i64} {
  func.func @kernel(%arg0: i32, %arg1: memref<2x16x128xf32, #tpu.memory_space<vmem>>, %arg2: memref<9x128xf32, #tpu.memory_space<vmem>>, %arg3: memref<256x128xf32, #tpu.memory_space<vmem>>, %arg4: memref<256x128xf32, #tpu.memory_space<vmem>>, %arg5: memref<128x128xf32, #tpu.memory_space<vmem>>, %arg6: memref<256x128xf32, #tpu.memory_space<vmem>>, %arg7: memref<256x128xf32, #tpu.memory_space<vmem>>, %arg8: memref<2x16x128xf32, #tpu.memory_space<vmem>>, %arg9: memref<2x24x128xf32, #tpu.memory_space<vmem>>, %arg10: memref<2x24x128xf32, #tpu.memory_space<vmem>>) attributes {dimension_semantics = [#tpu.dimension_semantics<parallel>], iteration_bounds = array<i64: 1>, scalar_prefetch = 0 : i64, scratch_operands = 2 : i64, tpu.core_type = #tpu.core_type<tc>, window_params = [{transform_indices = @transform_0, window_bounds = array<i64: 2, 16, 128>}, {pipeline_mode = #tpu.pipeline_mode<synchronous>, transform_indices = @transform_1, window_bounds = array<i64: 9, 128>}, {pipeline_mode = #tpu.pipeline_mode<synchronous>, transform_indices = @transform_2, window_bounds = array<i64: 256, 128>}, {pipeline_mode = #tpu.pipeline_mode<synchronous>, transform_indices = @transform_3, window_bounds = array<i64: 256, 128>}, {pipeline_mode = #tpu.pipeline_mode<synchronous>, transform_indices = @transform_4, window_bounds = array<i64: 128, 128>}, {pipeline_mode = #tpu.pipeline_mode<synchronous>, transform_indices = @transform_5, window_bounds = array<i64: 256, 128>}, {pipeline_mode = #tpu.pipeline_mode<synchronous>, transform_indices = @transform_6, window_bounds = array<i64: 256, 128>}, {transform_indices = @transform_7, window_bounds = array<i64: 2, 16, 128>}]} {
    %cst = arith.constant 0.000000e+00 : f32
    %0 = vector.broadcast %cst : f32 to vector<2x8x128xf32>
    %c0 = arith.constant 0 : index
    %c0_0 = arith.constant 0 : index
    %c0_1 = arith.constant 0 : index
    %1 = vector.load %arg9[%c0, %c0_0, %c0_1] : memref<2x24x128xf32, #tpu.memory_space<vmem>>, vector<2x8x128xf32>
    tpu.vector_store %arg9[%c0, %c0_0, %c0_1], %0 {strides = array<i32>} : memref<2x24x128xf32, #tpu.memory_space<vmem>>, vector<2x8x128xf32>,
    %c0_2 = arith.constant 0 : index
    %c0_3 = arith.constant 0 : index
    %c0_4 = arith.constant 0 : index
    %2 = vector.load %arg10[%c0_2, %c0_3, %c0_4] : memref<2x24x128xf32, #tpu.memory_space<vmem>>, vector<2x8x128xf32>
    tpu.vector_store %arg10[%c0_2, %c0_3, %c0_4], %0 {strides = array<i32>} : memref<2x24x128xf32, #tpu.memory_space<vmem>>, vector<2x8x128xf32>,
    %c0_5 = arith.constant 0 : index
    %c0_6 = arith.constant 0 : index
    %c0_7 = arith.constant 0 : index
    %3 = vector.load %arg1[%c0_5, %c0_6, %c0_7] : memref<2x16x128xf32, #tpu.memory_space<vmem>>, vector<2x16x128xf32>
    %c0_8 = arith.constant 0 : index
    %c8 = arith.constant 8 : index
    %c0_9 = arith.constant 0 : index
    %4 = vector.load %arg9[%c0_8, %c8, %c0_9] : memref<2x24x128xf32, #tpu.memory_space<vmem>>, vector<2x16x128xf32>
    tpu.vector_store %arg9[%c0_8, %c8, %c0_9], %3 {strides = array<i32>} : memref<2x24x128xf32, #tpu.memory_space<vmem>>, vector<2x16x128xf32>,
    %c0_10 = arith.constant 0 : index
    %c0_11 = arith.constant 0 : index
    %5 = vector.load %arg2[%c0_10, %c0_11] : memref<9x128xf32, #tpu.memory_space<vmem>>, vector<1x128xf32>
    %c1 = arith.constant 1 : index
    %c0_12 = arith.constant 0 : index
    %6 = vector.load %arg2[%c1, %c0_12] : memref<9x128xf32, #tpu.memory_space<vmem>>, vector<1x128xf32>
    %c2 = arith.constant 2 : index
    %c0_13 = arith.constant 0 : index
    %7 = vector.load %arg2[%c2, %c0_13] : memref<9x128xf32, #tpu.memory_space<vmem>>, vector<1x128xf32>
    %c3 = arith.constant 3 : index
    %c0_14 = arith.constant 0 : index
    %8 = vector.load %arg2[%c3, %c0_14] : memref<9x128xf32, #tpu.memory_space<vmem>>, vector<1x128xf32>
    %c4 = arith.constant 4 : index
    %c0_15 = arith.constant 0 : index
    %9 = vector.load %arg2[%c4, %c0_15] : memref<9x128xf32, #tpu.memory_space<vmem>>, vector<1x128xf32>
    %c0_16 = arith.constant 0 : index
    %c7 = arith.constant 7 : index
    %c0_17 = arith.constant 0 : index
    %10 = vector.load %arg9[%c0_16, %c7, %c0_17] : memref<2x24x128xf32, #tpu.memory_space<vmem>>, vector<2x16x128xf32>
    %11 = vector.shape_cast %10 : vector<2x16x128xf32> to vector<32x128xf32>
    %c0_18 = arith.constant 0 : index
    %c0_19 = arith.constant 0 : index
    %12 = vector.load %arg3[%c0_18, %c0_19] : memref<256x128xf32, #tpu.memory_space<vmem>>, vector<128x128xf32>
    %cst_20 = arith.constant dense<0.000000e+00> : vector<32x128xf32>
    %13 = tpu.matmul %11, %12, %cst_20 {dimension_numbers = #tpu.dot_dimension_numbers<[1], [0], [0], [1], [0, 0, 1, 1], [], []>} : vector<32x128xf32>, vector<128x128xf32>, vector<32x128xf32> -> vector<32x128xf32>
    %c0_21 = arith.constant 0 : index
    %c8_22 = arith.constant 8 : index
    %c0_23 = arith.constant 0 : index
    %14 = vector.load %arg9[%c0_21, %c8_22, %c0_23] : memref<2x24x128xf32, #tpu.memory_space<vmem>>, vector<2x16x128xf32>
    %15 = vector.shape_cast %14 : vector<2x16x128xf32> to vector<32x128xf32>
    %c128 = arith.constant 128 : index
    %c0_24 = arith.constant 0 : index
    %16 = vector.load %arg3[%c128, %c0_24] : memref<256x128xf32, #tpu.memory_space<vmem>>, vector<128x128xf32>
    %cst_25 = arith.constant dense<0.000000e+00> : vector<32x128xf32>
    %17 = tpu.matmul %15, %16, %cst_25 {dimension_numbers = #tpu.dot_dimension_numbers<[1], [0], [0], [1], [0, 0, 1, 1], [], []>} : vector<32x128xf32>, vector<128x128xf32>, vector<32x128xf32> -> vector<32x128xf32>
    %18 = arith.addf %13, %17 : vector<32x128xf32>
    %19 = vector.broadcast %5 : vector<1x128xf32> to vector<32x128xf32>
    %20 = arith.mulf %18, %19 : vector<32x128xf32>
    %21 = vector.broadcast %6 : vector<1x128xf32> to vector<32x128xf32>
    %22 = arith.addf %20, %21 : vector<32x128xf32>
    %cst_26 = arith.constant 0.000000e+00 : f32
    %23 = vector.broadcast %cst_26 : f32 to vector<32x128xf32>
    %24 = arith.maximumf %22, %23 : vector<32x128xf32>
    %25 = vector.shape_cast %24 : vector<32x128xf32> to vector<2x16x128xf32>
    %c0_27 = arith.constant 0 : index
    %c8_28 = arith.constant 8 : index
    %c0_29 = arith.constant 0 : index
    %26 = vector.load %arg10[%c0_27, %c8_28, %c0_29] : memref<2x24x128xf32, #tpu.memory_space<vmem>>, vector<2x16x128xf32>
    tpu.vector_store %arg10[%c0_27, %c8_28, %c0_29], %25 {strides = array<i32>} : memref<2x24x128xf32, #tpu.memory_space<vmem>>, vector<2x16x128xf32>,
    %c0_30 = arith.constant 0 : index
    %c7_31 = arith.constant 7 : index
    %c0_32 = arith.constant 0 : index
    %27 = vector.load %arg10[%c0_30, %c7_31, %c0_32] : memref<2x24x128xf32, #tpu.memory_space<vmem>>, vector<2x16x128xf32>
    %28 = vector.shape_cast %27 : vector<2x16x128xf32> to vector<32x128xf32>
    %c0_33 = arith.constant 0 : index
    %c0_34 = arith.constant 0 : index
    %29 = vector.load %arg4[%c0_33, %c0_34] : memref<256x128xf32, #tpu.memory_space<vmem>>, vector<128x128xf32>
    %cst_35 = arith.constant dense<0.000000e+00> : vector<32x128xf32>
    %30 = tpu.matmul %28, %29, %cst_35 {dimension_numbers = #tpu.dot_dimension_numbers<[1], [0], [0], [1], [0, 0, 1, 1], [], []>} : vector<32x128xf32>, vector<128x128xf32>, vector<32x128xf32> -> vector<32x128xf32>
    %c0_36 = arith.constant 0 : index
    %c8_37 = arith.constant 8 : index
    %c0_38 = arith.constant 0 : index
    %31 = vector.load %arg10[%c0_36, %c8_37, %c0_38] : memref<2x24x128xf32, #tpu.memory_space<vmem>>, vector<2x16x128xf32>
    %32 = vector.shape_cast %31 : vector<2x16x128xf32> to vector<32x128xf32>
    %c128_39 = arith.constant 128 : index
    %c0_40 = arith.constant 0 : index
    %33 = vector.load %arg4[%c128_39, %c0_40] : memref<256x128xf32, #tpu.memory_space<vmem>>, vector<128x128xf32>
    %cst_41 = arith.constant dense<0.000000e+00> : vector<32x128xf32>
    %34 = tpu.matmul %32, %33, %cst_41 {dimension_numbers = #tpu.dot_dimension_numbers<[1], [0], [0], [1], [0, 0, 1, 1], [], []>} : vector<32x128xf32>, vector<128x128xf32>, vector<32x128xf32> -> vector<32x128xf32>
    %35 = arith.addf %30, %34 : vector<32x128xf32>
    %36 = vector.broadcast %7 : vector<1x128xf32> to vector<32x128xf32>
    %37 = arith.mulf %35, %36 : vector<32x128xf32>
    %38 = vector.broadcast %8 : vector<1x128xf32> to vector<32x128xf32>
    %39 = arith.addf %37, %38 : vector<32x128xf32>
    %cst_42 = arith.constant 0.000000e+00 : f32
    %40 = vector.broadcast %cst_42 : f32 to vector<32x128xf32>
    %41 = arith.maximumf %39, %40 : vector<32x128xf32>
    %c0_43 = arith.constant 0 : index
    %c8_44 = arith.constant 8 : index
    %c0_45 = arith.constant 0 : index
    %42 = vector.load %arg9[%c0_43, %c8_44, %c0_45] : memref<2x24x128xf32, #tpu.memory_space<vmem>>, vector<2x16x128xf32>
    %43 = vector.shape_cast %42 : vector<2x16x128xf32> to vector<32x128xf32>
    %c0_46 = arith.constant 0 : index
    %c0_47 = arith.constant 0 : index
    %44 = vector.load %arg5[%c0_46, %c0_47] : memref<128x128xf32, #tpu.memory_space<vmem>>, vector<128x128xf32>
    %cst_48 = arith.constant dense<0.000000e+00> : vector<32x128xf32>
    %45 = tpu.matmul %43, %44, %cst_48 {dimension_numbers = #tpu.dot_dimension_numbers<[1], [0], [0], [1], [0, 0, 1, 1], [], []>} : vector<32x128xf32>, vector<128x128xf32>, vector<32x128xf32> -> vector<32x128xf32>
    %46 = vector.broadcast %9 : vector<1x128xf32> to vector<32x128xf32>
    %47 = arith.addf %45, %46 : vector<32x128xf32>
    %48 = arith.addf %41, %47 : vector<32x128xf32>
    %cst_49 = arith.constant 0.000000e+00 : f32
    %49 = vector.broadcast %cst_49 : f32 to vector<32x128xf32>
    %50 = arith.maximumf %48, %49 : vector<32x128xf32>
    %51 = vector.shape_cast %50 : vector<32x128xf32> to vector<2x16x128xf32>
    %c0_50 = arith.constant 0 : index
    %c8_51 = arith.constant 8 : index
    %c0_52 = arith.constant 0 : index
    %52 = vector.load %arg9[%c0_50, %c8_51, %c0_52] : memref<2x24x128xf32, #tpu.memory_space<vmem>>, vector<2x16x128xf32>
    tpu.vector_store %arg9[%c0_50, %c8_51, %c0_52], %51 {strides = array<i32>} : memref<2x24x128xf32, #tpu.memory_space<vmem>>, vector<2x16x128xf32>,
    %c5 = arith.constant 5 : index
    %c0_53 = arith.constant 0 : index
    %53 = vector.load %arg2[%c5, %c0_53] : memref<9x128xf32, #tpu.memory_space<vmem>>, vector<1x128xf32>
    %c6 = arith.constant 6 : index
    %c0_54 = arith.constant 0 : index
    %54 = vector.load %arg2[%c6, %c0_54] : memref<9x128xf32, #tpu.memory_space<vmem>>, vector<1x128xf32>
    %c7_55 = arith.constant 7 : index
    %c0_56 = arith.constant 0 : index
    %55 = vector.load %arg2[%c7_55, %c0_56] : memref<9x128xf32, #tpu.memory_space<vmem>>, vector<1x128xf32>
    %c8_57 = arith.constant 8 : index
    %c0_58 = arith.constant 0 : index
    %56 = vector.load %arg2[%c8_57, %c0_58] : memref<9x128xf32, #tpu.memory_space<vmem>>, vector<1x128xf32>
    %c0_59 = arith.constant 0 : index
    %c6_60 = arith.constant 6 : index
    %c0_61 = arith.constant 0 : index
    %57 = vector.load %arg9[%c0_59, %c6_60, %c0_61] : memref<2x24x128xf32, #tpu.memory_space<vmem>>, vector<2x16x128xf32>
    %58 = vector.shape_cast %57 : vector<2x16x128xf32> to vector<32x128xf32>
    %c0_62 = arith.constant 0 : index
    %c0_63 = arith.constant 0 : index
    %59 = vector.load %arg6[%c0_62, %c0_63] : memref<256x128xf32, #tpu.memory_space<vmem>>, vector<128x128xf32>
    %cst_64 = arith.constant dense<0.000000e+00> : vector<32x128xf32>
    %60 = tpu.matmul %58, %59, %cst_64 {dimension_numbers = #tpu.dot_dimension_numbers<[1], [0], [0], [1], [0, 0, 1, 1], [], []>} : vector<32x128xf32>, vector<128x128xf32>, vector<32x128xf32> -> vector<32x128xf32>
    %c0_65 = arith.constant 0 : index
    %c8_66 = arith.constant 8 : index
    %c0_67 = arith.constant 0 : index
    %61 = vector.load %arg9[%c0_65, %c8_66, %c0_67] : memref<2x24x128xf32, #tpu.memory_space<vmem>>, vector<2x16x128xf32>
    %62 = vector.shape_cast %61 : vector<2x16x128xf32> to vector<32x128xf32>
    %c128_68 = arith.constant 128 : index
    %c0_69 = arith.constant 0 : index
    %63 = vector.load %arg6[%c128_68, %c0_69] : memref<256x128xf32, #tpu.memory_space<vmem>>, vector<128x128xf32>
    %cst_70 = arith.constant dense<0.000000e+00> : vector<32x128xf32>
    %64 = tpu.matmul %62, %63, %cst_70 {dimension_numbers = #tpu.dot_dimension_numbers<[1], [0], [0], [1], [0, 0, 1, 1], [], []>} : vector<32x128xf32>, vector<128x128xf32>, vector<32x128xf32> -> vector<32x128xf32>
    %65 = arith.addf %60, %64 : vector<32x128xf32>
    %66 = vector.broadcast %53 : vector<1x128xf32> to vector<32x128xf32>
    %67 = arith.mulf %65, %66 : vector<32x128xf32>
    %68 = vector.broadcast %54 : vector<1x128xf32> to vector<32x128xf32>
    %69 = arith.addf %67, %68 : vector<32x128xf32>
    %cst_71 = arith.constant 0.000000e+00 : f32
    %70 = vector.broadcast %cst_71 : f32 to vector<32x128xf32>
    %71 = arith.maximumf %69, %70 : vector<32x128xf32>
    %72 = vector.shape_cast %71 : vector<32x128xf32> to vector<2x16x128xf32>
    %c0_72 = arith.constant 0 : index
    %c8_73 = arith.constant 8 : index
    %c0_74 = arith.constant 0 : index
    %73 = vector.load %arg10[%c0_72, %c8_73, %c0_74] : memref<2x24x128xf32, #tpu.memory_space<vmem>>, vector<2x16x128xf32>
    tpu.vector_store %arg10[%c0_72, %c8_73, %c0_74], %72 {strides = array<i32>} : memref<2x24x128xf32, #tpu.memory_space<vmem>>, vector<2x16x128xf32>,
    %c0_75 = arith.constant 0 : index
    %c6_76 = arith.constant 6 : index
    %c0_77 = arith.constant 0 : index
    %74 = vector.load %arg10[%c0_75, %c6_76, %c0_77] : memref<2x24x128xf32, #tpu.memory_space<vmem>>, vector<2x16x128xf32>
    %75 = vector.shape_cast %74 : vector<2x16x128xf32> to vector<32x128xf32>
    %c0_78 = arith.constant 0 : index
    %c0_79 = arith.constant 0 : index
    %76 = vector.load %arg7[%c0_78, %c0_79] : memref<256x128xf32, #tpu.memory_space<vmem>>, vector<128x128xf32>
    %cst_80 = arith.constant dense<0.000000e+00> : vector<32x128xf32>
    %77 = tpu.matmul %75, %76, %cst_80 {dimension_numbers = #tpu.dot_dimension_numbers<[1], [0], [0], [1], [0, 0, 1, 1], [], []>} : vector<32x128xf32>, vector<128x128xf32>, vector<32x128xf32> -> vector<32x128xf32>
    %c0_81 = arith.constant 0 : index
    %c8_82 = arith.constant 8 : index
    %c0_83 = arith.constant 0 : index
    %78 = vector.load %arg10[%c0_81, %c8_82, %c0_83] : memref<2x24x128xf32, #tpu.memory_space<vmem>>, vector<2x16x128xf32>
    %79 = vector.shape_cast %78 : vector<2x16x128xf32> to vector<32x128xf32>
    %c128_84 = arith.constant 128 : index
    %c0_85 = arith.constant 0 : index
    %80 = vector.load %arg7[%c128_84, %c0_85] : memref<256x128xf32, #tpu.memory_space<vmem>>, vector<128x128xf32>
    %cst_86 = arith.constant dense<0.000000e+00> : vector<32x128xf32>
    %81 = tpu.matmul %79, %80, %cst_86 {dimension_numbers = #tpu.dot_dimension_numbers<[1], [0], [0], [1], [0, 0, 1, 1], [], []>} : vector<32x128xf32>, vector<128x128xf32>, vector<32x128xf32> -> vector<32x128xf32>
    %82 = arith.addf %77, %81 : vector<32x128xf32>
    %83 = vector.broadcast %55 : vector<1x128xf32> to vector<32x128xf32>
    %84 = arith.mulf %82, %83 : vector<32x128xf32>
    %85 = vector.broadcast %56 : vector<1x128xf32> to vector<32x128xf32>
    %86 = arith.addf %84, %85 : vector<32x128xf32>
    %cst_87 = arith.constant 0.000000e+00 : f32
    %87 = vector.broadcast %cst_87 : f32 to vector<32x128xf32>
    %88 = arith.maximumf %86, %87 : vector<32x128xf32>
    %c0_88 = arith.constant 0 : index
    %c8_89 = arith.constant 8 : index
    %c0_90 = arith.constant 0 : index
    %89 = vector.load %arg9[%c0_88, %c8_89, %c0_90] : memref<2x24x128xf32, #tpu.memory_space<vmem>>, vector<2x16x128xf32>
    %90 = vector.shape_cast %89 : vector<2x16x128xf32> to vector<32x128xf32>
    %91 = arith.addf %88, %90 : vector<32x128xf32>
    %cst_91 = arith.constant 0.000000e+00 : f32
    %92 = vector.broadcast %cst_91 : f32 to vector<32x128xf32>
    %93 = arith.maximumf %91, %92 : vector<32x128xf32>
    %94 = vector.shape_cast %93 : vector<32x128xf32> to vector<2x16x128xf32>
    %c0_92 = arith.constant 0 : index
    %c0_93 = arith.constant 0 : index
    %c0_94 = arith.constant 0 : index
    %95 = vector.load %arg8[%c0_92, %c0_93, %c0_94] : memref<2x16x128xf32, #tpu.memory_space<vmem>>, vector<2x16x128xf32>
    tpu.vector_store %arg8[%c0_92, %c0_93, %c0_94], %94 {strides = array<i32>} : memref<2x16x128xf32, #tpu.memory_space<vmem>>, vector<2x16x128xf32>,
    return
  }
  func.func @transform_0(%arg0: i32) -> (i32, i32, i32) {
    %c0_i32 = arith.constant 0 : i32
    %c0_i32_0 = arith.constant 0 : i32
    %c0_i32_1 = arith.constant 0 : i32
    return %arg0, %c0_i32, %c0_i32_0 : i32, i32, i32
  }
  func.func @transform_1(%arg0: i32) -> (i32, i32) {
    %c0_i32 = arith.constant 0 : i32
    %c0_i32_0 = arith.constant 0 : i32
    %c0_i32_1 = arith.constant 0 : i32
    return %c0_i32, %c0_i32_0 : i32, i32
  }
  func.func @transform_2(%arg0: i32) -> (i32, i32) {
    %c0_i32 = arith.constant 0 : i32
    %c0_i32_0 = arith.constant 0 : i32
    %c0_i32_1 = arith.constant 0 : i32
    return %c0_i32, %c0_i32_0 : i32, i32
  }
  func.func @transform_3(%arg0: i32) -> (i32, i32) {
    %c0_i32 = arith.constant 0 : i32
    %c0_i32_0 = arith.constant 0 : i32
    %c0_i32_1 = arith.constant 0 : i32
    return %c0_i32, %c0_i32_0 : i32, i32
  }
  func.func @transform_4(%arg0: i32) -> (i32, i32) {
    %c0_i32 = arith.constant 0 : i32
    %c0_i32_0 = arith.constant 0 : i32
    %c0_i32_1 = arith.constant 0 : i32
    return %c0_i32, %c0_i32_0 : i32, i32
  }
  func.func @transform_5(%arg0: i32) -> (i32, i32) {
    %c0_i32 = arith.constant 0 : i32
    %c0_i32_0 = arith.constant 0 : i32
    %c0_i32_1 = arith.constant 0 : i32
    return %c0_i32, %c0_i32_0 : i32, i32
  }
  func.func @transform_6(%arg0: i32) -> (i32, i32) {
    %c0_i32 = arith.constant 0 : i32
    %c0_i32_0 = arith.constant 0 : i32
    %c0_i32_1 = arith.constant 0 : i32
    return %c0_i32, %c0_i32_0 : i32, i32
  }
  func.func @transform_7(%arg0: i32) -> (i32, i32, i32) {
    %c0_i32 = arith.constant 0 : i32
    %c0_i32_0 = arith.constant 0 : i32
    %c0_i32_1 = arith.constant 0 : i32
    return %arg0, %c0_i32, %c0_i32_0 : i32, i32, i32
  }
}

</mosaic_0001>

<bundles_post_ra>
// kernel: tpu_custom_call.1
= control target key start
LH: loop header
LB: loop body
LE: loop exit
PB: predicated region body
PF: predicated region fallthrough
CT: control target
= control target key end

     0   :  { %12 = vsyncpa [#allocation5], 0  ;;  %s2536_s0 = inlined_call_operand.hbm [shape: f32[2,16,128], index: 0, kind: input, shape index: {}]   ;;  %s2537_s1 = inlined_call_operand.hbm [shape: f32[9,128], index: 1, kind: input, shape index: {}]   ;;  %s2538_s2 = inlined_call_operand.hbm [shape: f32[256,128], index: 2, kind: input, shape index: {}]   ;;  %s2539_s3 = inlined_call_operand.hbm [shape: f32[256,128], index: 3, kind: input, shape index: {}]   ;;  %s2540_s4 = inlined_call_operand.hbm [shape: f32[128,128], index: 4, kind: input, shape index: {}]   ;;  %s2541_s5 = inlined_call_operand.hbm [shape: f32[256,128], index: 5, kind: input, shape index: {}]   ;;  %s2542_s6 = inlined_call_operand.hbm [shape: f32[256,128], index: 6, kind: input, shape index: {}]   ;;  %s2543_s7 = inlined_call_operand.hbm [shape: f32[2,16,128], index: 7, kind: output, shape index: {}]  }
   0x1   :  { %13 = vsyncpa [#allocation8], 0 }
   0x2   :  { %14 = vsyncpa [#allocation11], 0 }
   0x3   :  { %15 = vsyncpa [#allocation14], 0 }
   0x4   :  { %16 = vsyncpa [#allocation6], 0  ;;  %s2276_s24 = smov [#allocation7]   ;;  %s2277_s26 = smov [#allocation10]  }
   0x5   :  { %s34_s25 = sshll.u32 %s2276_s24, 4  ;;  %s58_s27 = sshll.u32 %s2277_s26, 4  ;;  %s35_s25 = int_to_ptr.vmem [resolvable:$true] %s34_s25  ;;  %s2327_s27 = int_to_ptr.vmem [resolvable:$true] %s58_s27 }
   0x6   :  { %s2090_s30 = scalar_lea.hbm %s2537_s1, 256 }
   0x7   :  { %p2091_p0 = scmp.ne.s32.totalorder %s2537_s1, %s2090_s30  ;;  %p2094_p1 = scmp.lt.u32.totalorder %s2090_s30, %s2537_s1 }
   0x9   :  { %p2096_p2 = pnand %p2094_p1, %p2091_p0 }
   0xb   :  { %2099 = shalt.err (!%p2096_p2)
}
   0xc   :  { %s2100_s12 = scalar_lea.vmem %s35_s25, 256  ;;  %p2105_p4 = scmp.lt.s32.totalorder %s35_s25, %s35_s25 }
   0xd   :  { %p2101_p3 = scmp.ne.s32.totalorder %s35_s25, %s2100_s12  ;;  %p2106_p5 = scmp.lt.s32.totalorder %s2100_s12, %s2100_s12 }
   0xf   :  { %p2107_p6 = por %p2106_p5, %p2105_p4 }
  0x11   :  { %p2108_p7 = pnand %p2107_p6, %p2101_p3 }
  0x13   :  { %2111 = shalt.err (!%p2108_p7)
}
  0x14   :  { %s2278_s13 = smov 128   ;;  %s2279_s14 = smov 8  }
  0x15   :  { %40 = dma.hbm_to_vmem [thread:$0]  %s2537_s1, 256, %s35_s25, [#allocation8], %s2278_s13, %s2278_s13, %s2279_s14  }
  0x16   :  { %s2112_s19 = scalar_lea.hbm %s2539_s3, 4096 }
  0x17   :  { %p2113_p8 = scmp.ne.s32.totalorder %s2539_s3, %s2112_s19  ;;  %p2116_p9 = scmp.lt.u32.totalorder %s2112_s19, %s2539_s3 }
  0x19   :  { %p2118_p10 = pnand %p2116_p9, %p2113_p8 }
  0x1b   :  { %2121 = shalt.err (!%p2118_p10)
}
  0x1c   :  { %s2122_s24 = scalar_lea.vmem %s2327_s27, 4096  ;;  %p2127_p12 = scmp.lt.s32.totalorder %s2327_s27, %s2327_s27 }
  0x1d   :  { %p2123_p11 = scmp.ne.s32.totalorder %s2327_s27, %s2122_s24  ;;  %p2128_p13 = scmp.lt.s32.totalorder %s2122_s24, %s2122_s24 }
  0x1f   :  { %p2129_p0 = por %p2128_p13, %p2127_p12 }
  0x21   :  { %p2130_p1 = pnand %p2129_p0, %p2123_p11 }
  0x23   :  { %2133 = shalt.err (!%p2130_p1)
}
  0x24   :  { %64 = dma.hbm_to_vmem [thread:$0]  %s2539_s3, 4096, %s2327_s27, [#allocation11], %s2278_s13, %s2278_s13, %s2279_s14  }
  0x25   :  { %s2280_s26 = smov [#allocation13]   ;;  %s2281_s29 = smov [#allocation4]  }
  0x26   :  { %s82_s28 = sshll.u32 %s2280_s26, 4  ;;  %s22_s30 = sshll.u32 %s2281_s29, 4  ;;  %s83_s28 = int_to_ptr.vmem [resolvable:$true] %s82_s28  ;;  %s2364_s30 = int_to_ptr.vmem [resolvable:$true] %s22_s30 }
  0x27   :  { %s2134_s10 = scalar_lea.hbm %s2541_s5, 4096 }
  0x28   :  { %p2135_p2 = scmp.ne.s32.totalorder %s2541_s5, %s2134_s10  ;;  %p2138_p3 = scmp.lt.u32.totalorder %s2134_s10, %s2541_s5 }
  0x2a   :  { %p2140_p4 = pnand %p2138_p3, %p2135_p2 }
  0x2c   :  { %2143 = shalt.err (!%p2140_p4)
}
  0x2d   :  { %s2144_s3 = scalar_lea.vmem %s83_s28, 4096  ;;  %p2149_p6 = scmp.lt.s32.totalorder %s83_s28, %s83_s28 }
  0x2e   :  { %p2145_p5 = scmp.ne.s32.totalorder %s83_s28, %s2144_s3  ;;  %p2150_p7 = scmp.lt.s32.totalorder %s2144_s3, %s2144_s3 }
  0x30   :  { %p2151_p8 = por %p2150_p7, %p2149_p6 }
  0x32   :  { %p2152_p9 = pnand %p2151_p8, %p2145_p5 }
  0x34   :  { %2155 = shalt.err (!%p2152_p9)
}
  0x35   :  { %88 = dma.hbm_to_vmem [thread:$0]  %s2541_s5, 4096, %s83_s28, [#allocation14], %s2278_s13, %s2278_s13, %s2279_s14  }
  0x36   :  { %s2156_s20 = scalar_lea.hbm %s2536_s0, 512 }
  0x37   :  { %p2157_p10 = scmp.ne.s32.totalorder %s2536_s0, %s2156_s20  ;;  %p2160_p11 = scmp.lt.u32.totalorder %s2156_s20, %s2536_s0 }
  0x39   :  { %p2162_p12 = pnand %p2160_p11, %p2157_p10 }
  0x3b   :  { %2165 = shalt.err (!%p2162_p12)
}
  0x3c   :  { %s2166_s1 = scalar_lea.vmem %s2364_s30, 512  ;;  %p2171_p0 = scmp.lt.s32.totalorder %s2364_s30, %s2364_s30 }
  0x3d   :  { %p2167_p13 = scmp.ne.s32.totalorder %s2364_s30, %s2166_s1  ;;  %p2172_p1 = scmp.lt.s32.totalorder %s2166_s1, %s2166_s1 }
  0x3f   :  { %p2173_p2 = por %p2172_p1, %p2171_p0 }
  0x41   :  { %p2174_p3 = pnand %p2173_p2, %p2167_p13 }
  0x43   :  { %2177 = shalt.err (!%p2174_p3)
}
  0x44   :  { %28 = dma.hbm_to_vmem [thread:$0]  %s2536_s0, 512, %s2364_s30, [#allocation5], %s2278_s13, %s2278_s13, %s2279_s14  }
  0x45   :  { %s2282_s26 = smov [#allocation9]   ;;  %s2283_s29 = smov [#allocation12]  }
  0x46   :  { %s46_s28 = sshll.u32 %s2282_s26, 4  ;;  %s70_s8 = sshll.u32 %s2283_s29, 4  ;;  %s47_s28 = int_to_ptr.vmem [resolvable:$true] %s46_s28  ;;  %s2401_s8 = int_to_ptr.vmem [resolvable:$true] %s70_s8 }
  0x47   :  { %s2178_s11 = scalar_lea.hbm %s2538_s2, 4096 }
  0x48   :  { %p2179_p4 = scmp.ne.s32.totalorder %s2538_s2, %s2178_s11  ;;  %p2182_p5 = scmp.lt.u32.totalorder %s2178_s11, %s2538_s2 }
  0x4a   :  { %p2184_p6 = pnand %p2182_p5, %p2179_p4 }
  0x4c   :  { %2187 = shalt.err (!%p2184_p6)
}
  0x4d   :  { %s2188_s0 = scalar_lea.vmem %s47_s28, 4096  ;;  %p2193_p8 = scmp.lt.s32.totalorder %s47_s28, %s47_s28 }
  0x4e   :  { %p2189_p7 = scmp.ne.s32.totalorder %s47_s28, %s2188_s0  ;;  %p2194_p9 = scmp.lt.s32.totalorder %s2188_s0, %s2188_s0 }
  0x50   :  { %p2195_p10 = por %p2194_p9, %p2193_p8 }
  0x52   :  { %p2196_p11 = pnand %p2195_p10, %p2189_p7 }
  0x54   :  { %2199 = shalt.err (!%p2196_p11)
}
  0x55   :  { %52 = dma.hbm_to_vmem [thread:$0]  %s2538_s2, 4096, %s47_s28, [#allocation8], %s2278_s13, %s2278_s13, %s2279_s14  }
  0x56   :  { %s2200_s19 = scalar_lea.hbm %s2540_s4, 2048 }
  0x57   :  { %p2201_p12 = scmp.ne.s32.totalorder %s2540_s4, %s2200_s19  ;;  %p2204_p13 = scmp.lt.u32.totalorder %s2200_s19, %s2540_s4 }
  0x59   :  { %p2206_p0 = pnand %p2204_p13, %p2201_p12 }
  0x5b   :  { %2209 = shalt.err (!%p2206_p0)
}
  0x5c   :  { %s2210_s24 = scalar_lea.vmem %s2401_s8, 2048  ;;  %p2215_p2 = scmp.lt.s32.totalorder %s2401_s8, %s2401_s8 }
  0x5d   :  { %p2211_p1 = scmp.ne.s32.totalorder %s2401_s8, %s2210_s24  ;;  %p2216_p3 = scmp.lt.s32.totalorder %s2210_s24, %s2210_s24 }
  0x5f   :  { %p2217_p4 = por %p2216_p3, %p2215_p2 }
  0x61   :  { %p2218_p5 = pnand %p2217_p4, %p2211_p1 }
  0x63   :  { %2221 = shalt.err (!%p2218_p5)
}
  0x64   :  { %76 = dma.hbm_to_vmem [thread:$0]  %s2540_s4, 2048, %s2401_s8, [#allocation11], %s2278_s13, %s2278_s13, %s2279_s14  }
  0x65   :  { %s2284_s5 = smov [#allocation15]   ;;  %s2222_s29 = scalar_lea.hbm %s2542_s6, 4096 }
  0x66   :  { %s94_s25 = sshll.u32 %s2284_s5, 4  ;;  %p2223_p6 = scmp.ne.s32.totalorder %s2542_s6, %s2222_s29  ;;  %s95_s25 = int_to_ptr.vmem [resolvable:$true] %s94_s25 }
  0x67   :  { %p2226_p7 = scmp.lt.u32.totalorder %s2222_s29, %s2542_s6 }
  0x69   :  { %p2228_p8 = pnand %p2226_p7, %p2223_p6 }
  0x6b   :  { %2231 = shalt.err (!%p2228_p8)
}
  0x6c   :  { %s2232_s15 = scalar_lea.vmem %s95_s25, 4096  ;;  %p2237_p10 = scmp.lt.s32.totalorder %s95_s25, %s95_s25 }
  0x6d   :  { %p2233_p9 = scmp.ne.s32.totalorder %s95_s25, %s2232_s15  ;;  %p2238_p11 = scmp.lt.s32.totalorder %s2232_s15, %s2232_s15 }
  0x6f   :  { %p2239_p12 = por %p2238_p11, %p2237_p10 }
  0x71   :  { %p2240_p13 = pnand %p2239_p12, %p2233_p9 }
  0x73   :  { %2243 = shalt.err (!%p2240_p13)
}
  0x74   :  { %100 = dma.hbm_to_vmem [thread:$0]  %s2542_s6, 4096, %s95_s25, [#allocation14], %s2278_s13, %s2278_s13, %s2279_s14  }
  0x75   :  { %2266 = dma.done.wait [#allocation5], 512  }
  0x76   :  { %2267 = vsyncadd [#allocation5], 4294966784 }
  0x77   :  { %2268 = dma.done.wait [#allocation8], 4352  }
  0x78   :  { %2269 = vsyncadd [#allocation8], 4294962944 }
  0x79   :  { %2270 = dma.done.wait [#allocation11], 6144  }
  0x7a   :  { %2271 = vsyncadd [#allocation11], 4294961152 }
  0x7b   :  { %2272 = dma.done.wait [#allocation14], 8192  }
  0x7c   :  { %2273 = vsyncadd [#allocation14], 4294959104  ;;  %v2285_v0 = vmov 0.0   ;;  %v163_v1 = vld [vmem:[#allocation9 + $0x80] sm:$0xff]  ;;  %v164_v2 = vld [vmem:[#allocation9 + $0x88] sm:$0xff]  ;;  %s2286_s6 = smov [#allocation16]  }
  0x7d   :  { %122 = vst [vmem:[#allocation2] sm:$0xff] %v2285_v0  ;;  %123 = vst [vmem:[#allocation2 + $0x18] sm:$0xff] %v2285_v0  ;;  %v165_v3 = vld [vmem:[#allocation9 + $0x90] sm:$0xff]  ;;  %v1759_v4 = vpack.c.bf16 %v164_v2, %v163_v1  ;;  %v166_v5 = vld [vmem:[#allocation9 + $0x98] sm:$0xff]  ;;  %s1213_s16 = sshll.u32 %s2286_s6, 4  ;;  %s1214_s16 = int_to_ptr.vmem [resolvable:$true] %s1213_s16 }
  0x7e   :  { %124 = vst [vmem:[#allocation3] sm:$0xff] %v2285_v0  ;;  %125 = vst [vmem:[#allocation3 + $0x18] sm:$0xff] %v2285_v0  ;;  %v1763_v6 = vpack.c.bf16 %v166_v5, %v165_v3  ;;  %v167_v7 = vld [vmem:[#allocation9 + $0xa0] sm:$0xff]  ;;  %v168_v8 = vld [vmem:[#allocation9 + $0xa8] sm:$0xff]  ;;  %s2244_s3 = scalar_lea.vmem %s1214_s16, 512  ;;  %p2249_p1 = scmp.lt.s32.totalorder %s1214_s16, %s1214_s16 }
  0x7f   :  { %1760 = vmatprep.subr.bf16.mxu0 %v1759_v4  ;;  %v1767_v9 = vpack.c.bf16 %v168_v8, %v167_v7  ;;  %v2453_v10 = vld [vmem:[#allocation4] sm:$0xff]  ;;  %v170_v12 = vld [vmem:[#allocation9 + $0xb8] sm:$0xff]  ;;  %v171_v15 = vld [vmem:[#allocation9 + $0xc0] sm:$0xff]  ;;  %p2245_p0 = scmp.ne.s32.totalorder %s1214_s16, %s2244_s3  ;;  %p2250_p2 = scmp.lt.s32.totalorder %s2244_s3, %s2244_s3 }
  0x80   :  { %1762 = vmatpush3.bf16.msra.mxu0 %v1759_v4  ;;  %v169_v11 = vld [vmem:[#allocation9 + $0xb0] sm:$0xff]  ;;  %130 = vst [vmem:[#allocation2 + $0x8] sm:$0xff] %v2453_v10  ;;  %1449 = vmatprep.mubr.f32.mxu0 %v2453_v10  ;;  %v2457_v13 = vld [vmem:[#allocation4 + $0x8] sm:$0xff]  ;;  %v172_v16 = vld [vmem:[#allocation9 + $0xc8] sm:$0xff] }
  0x81   :  { %1764 = vmatprep.subr.bf16.mxu0 %v1763_v6  ;;  %131 = vst [vmem:[#allocation2 + $0x10] sm:$0xff] %v2457_v13  ;;  %v1771_v14 = vpack.c.bf16 %v170_v12, %v169_v11  ;;  %v2460_v17 = vld [vmem:[#allocation4 + $0x10] sm:$0xff]  ;;  %v2463_v18 = vld [vmem:[#allocation4 + $0x18] sm:$0xff]  ;;  %v399_v21 = vld [vmem:[#allocation10 + $0x90] sm:$0xff]  ;;  %v1775_v22 = vpack.c.bf16 %v172_v16, %v171_v15  ;;  %p2251_p3 = por %p2250_p2, %p2249_p1 }
  0x82   :  { %132 = vst [vmem:[#allocation2 + $0x20] sm:$0xff] %v2460_v17  ;;  %133 = vst [vmem:[#allocation2 + $0x28] sm:$0xff] %v2463_v18  ;;  %v397_v19 = vld [vmem:[#allocation10 + $0x80] sm:$0xff]  ;;  %v398_v20 = vld [vmem:[#allocation10 + $0x88] sm:$0xff] }
  0x83   :  { %v173_v23 = vld [vmem:[#allocation9 + $0xd0] sm:$0xff]  ;;  %v1823_v24 = vpack.c.bf16 %v398_v20, %v397_v19  ;;  %v400_v25 = vld [vmem:[#allocation10 + $0x98] sm:$0xff]  ;;  %v401_v28 = vld [vmem:[#allocation10 + $0xa0] sm:$0xff]  ;;  %p2252_p4 = pnand %p2251_p3, %p2245_p0 }
  0x84   :  { %1766 = vmatpush3.bf16.msra.mxu0 %v1763_v6  ;;  %v174_v26 = vld [vmem:[#allocation9 + $0xd8] sm:$0xff]  ;;  %v1827_v27 = vpack.c.bf16 %v400_v25, %v399_v21  ;;  %v402_v29 = vld [vmem:[#allocation10 + $0xa8] sm:$0xff]  ;;  %v175_v31 = vld [vmem:[#allocation9 + $0xe0] sm:$0xff] }
  0x85   :  { %1768 = vmatprep.subr.bf16.mxu0 %v1767_v9  ;;  %1824 = vmatprep.subr.bf16.mxu1 %v1823_v24  ;;  %v1779_v30 = vpack.c.bf16 %v174_v26, %v173_v23  ;;  %v1831_v32 = vpack.c.bf16 %v402_v29, %v401_v28  ;;  %v176_v33 = vld [vmem:[#allocation9 + $0xe8] sm:$0xff]  ;;  %v403_v34 = vld [vmem:[#allocation10 + $0xb0] sm:$0xff]  ;;  %v404_v35 = vld [vmem:[#allocation10 + $0xb8] sm:$0xff] }
  0x86   :  { %1826 = vmatpush3.bf16.msra.mxu1 %v1823_v24  ;;  %v1783_v36 = vpack.c.bf16 %v176_v33, %v175_v31  ;;  %v1835_v37 = vpack.c.bf16 %v404_v35, %v403_v34  ;;  %v177_v38 = vld [vmem:[#allocation9 + $0xf0] sm:$0xff]  ;;  %v178_v39 = vld [vmem:[#allocation9 + $0xf8] sm:$0xff]  ;;  %v143_v41 = vld [vmem:[#allocation9] sm:$0xff] }
  0x87   :  { %1828 = vmatprep.subr.bf16.mxu1 %v1827_v27  ;;  %v1787_v40 = vpack.c.bf16 %v178_v39, %v177_v38  ;;  %v144_v42 = vld [vmem:[#allocation9 + $0x8] sm:$0xff]  ;;  %v145_v44 = vld [vmem:[#allocation9 + $0x10] sm:$0xff]  ;;  %v146_v45 = vld [vmem:[#allocation9 + $0x18] sm:$0xff] }
  0x88   :  { %1770 = vmatpush3.bf16.msra.mxu0 %v1767_v9  ;;  %v1791_v43 = vpack.c.bf16 %v144_v42, %v143_v41  ;;  %v1795_v46 = vpack.c.bf16 %v146_v45, %v145_v44  ;;  %v147_v47 = vld [vmem:[#allocation9 + $0x20] sm:$0xff]  ;;  %v148_v48 = vld [vmem:[#allocation9 + $0x28] sm:$0xff]  ;;  %v139_v50 = vld [vmem:[#allocation2 + $0x7] sm:$0xff] }
  0x89   :  { %1772 = vmatprep.subr.bf16.mxu0 %v1771_v14  ;;  %v1799_v49 = vpack.c.bf16 %v148_v48, %v147_v47  ;;  %v149_v51 = vld [vmem:[#allocation9 + $0x30] sm:$0xff]  ;;  %v150_v52 = vld [vmem:[#allocation9 + $0x38] sm:$0xff]  ;;  %v151_v54 = vld [vmem:[#allocation9 + $0x40] sm:$0xff] }
  0x8a   :  { %1830 = vmatpush3.bf16.msra.mxu1 %v1827_v27  ;;  %v1803_v53 = vpack.c.bf16 %v150_v52, %v149_v51  ;;  %v152_v55 = vld [vmem:[#allocation9 + $0x48] sm:$0xff]  ;;  %v153_v57 = vld [vmem:[#allocation9 + $0x50] sm:$0xff]  ;;  %v154_v58 = vld [vmem:[#allocation9 + $0x58] sm:$0xff] }
  0x8b   :  { %1832 = vmatprep.subr.bf16.mxu1 %v1831_v32  ;;  %v1807_v56 = vpack.c.bf16 %v152_v55, %v151_v54  ;;  %v1811_v59 = vpack.c.bf16 %v154_v58, %v153_v57  ;;  %v155_v60 = vld [vmem:[#allocation9 + $0x60] sm:$0xff]  ;;  %v156_v61 = vld [vmem:[#allocation9 + $0x68] sm:$0xff]  ;;  %v157_v63 = vld [vmem:[#allocation9 + $0x70] sm:$0xff] }
  0x8c   :  { %1774 = vmatpush3.bf16.msra.mxu0 %v1771_v14  ;;  %v1815_v62 = vpack.c.bf16 %v156_v61, %v155_v60  ;;  %v158_v0 = vld [vmem:[#allocation9 + $0x78] sm:$0xff]  ;;  %v141_v3 = vld [vmem:[#allocation2 + $0x1f] sm:$0xff]  ;;  %v405_v5 = vld [vmem:[#allocation10 + $0xc0] sm:$0xff] }
  0x8d   :  { %1776 = vmatprep.subr.bf16.mxu0 %v1775_v22  ;;  %v1819_v1 = vpack.c.bf16 %v158_v0, %v157_v63  ;;  %v140_v2 = vld [vmem:[#allocation2 + $0xf] sm:$0xff]  ;;  %v142_v4 = vld [vmem:[#allocation2 + $0x27] sm:$0xff]  ;;  %v406_v6 = vld [vmem:[#allocation10 + $0xc8] sm:$0xff] }
  0x8e   :  { %1834 = vmatpush3.bf16.msra.mxu1 %v1831_v32  ;;  %v1839_v7 = vpack.c.bf16 %v406_v6, %v405_v5  ;;  %v407_v8 = vld [vmem:[#allocation10 + $0xd0] sm:$0xff]  ;;  %v408_v9 = vld [vmem:[#allocation10 + $0xd8] sm:$0xff]  ;;  %v409_v12 = vld [vmem:[#allocation10 + $0xe0] sm:$0xff] }
  0x8f   :  { %1836 = vmatprep.subr.bf16.mxu1 %v1835_v37  ;;  %v1843_v11 = vpack.c.bf16 %v408_v9, %v407_v8  ;;  %v410_v14 = vld [vmem:[#allocation10 + $0xe8] sm:$0xff]  ;;  %v411_v16 = vld [vmem:[#allocation10 + $0xf0] sm:$0xff]  ;;  %v412_v19 = vld [vmem:[#allocation10 + $0xf8] sm:$0xff] }
  0x90   :  { %1778 = vmatpush3.bf16.msra.mxu0 %v1775_v22  ;;  %v1847_v15 = vpack.c.bf16 %v410_v14, %v409_v12  ;;  %v1851_v20 = vpack.c.bf16 %v412_v19, %v411_v16  ;;  %v378_v21 = vld [vmem:[#allocation10 + $0x8] sm:$0xff]  ;;  %v607_v23 = vld [vmem:[#allocation12] sm:$0xff]  ;;  %v609_v26 = vld [vmem:[#allocation12 + $0x10] sm:$0xff] }
  0x91   :  { %1780 = vmatprep.subr.bf16.mxu0 %v1779_v30  ;;  %v608_v24 = vld [vmem:[#allocation12 + $0x8] sm:$0xff]  ;;  %v610_v27 = vld [vmem:[#allocation12 + $0x18] sm:$0xff]  ;;  %v611_v29 = vld [vmem:[#allocation12 + $0x20] sm:$0xff] }
  0x92   :  { %1838 = vmatpush3.bf16.msra.mxu1 %v1835_v37  ;;  %v1887_v25 = vpack.c.bf16 %v608_v24, %v607_v23  ;;  %v1891_v28 = vpack.c.bf16 %v610_v27, %v609_v26  ;;  %v613_v32 = vld [vmem:[#allocation12 + $0x30] sm:$0xff]  ;;  %v614_v33 = vld [vmem:[#allocation12 + $0x38] sm:$0xff]  ;;  %v615_v35 = vld [vmem:[#allocation12 + $0x40] sm:$0xff] }
  0x93   :  { %1840 = vmatprep.subr.bf16.mxu1 %v1839_v7  ;;  %v1899_v34 = vpack.c.bf16 %v614_v33, %v613_v32  ;;  %v617_v38 = vld [vmem:[#allocation12 + $0x50] sm:$0xff]  ;;  %v618_v39 = vld [vmem:[#allocation12 + $0x58] sm:$0xff]  ;;  %v619_v41 = vld [vmem:[#allocation12 + $0x60] sm:$0xff] }
  0x94   :  { %1782 = vmatpush3.bf16.msra.mxu0 %v1779_v30  ;;  %v612_v30 = vld [vmem:[#allocation12 + $0x28] sm:$0xff]  ;;  %v621_v44 = vld [vmem:[#allocation12 + $0x70] sm:$0xff]  ;;  %v622_v45 = vld [vmem:[#allocation12 + $0x78] sm:$0xff] }
  0x95   :  { %1784 = vmatprep.subr.bf16.mxu0 %v1783_v36  ;;  %v1895_v31 = vpack.c.bf16 %v612_v30, %v611_v29  ;;  %v620_v42 = vld [vmem:[#allocation12 + $0x68] sm:$0xff]  ;;  %v1228_v47 = vld [vmem:[#allocation7] ss:$0 sm:$0xff]  ;;  %v1229_v48 = vld [vmem:[#allocation7 + $0x1] ss:$0 sm:$0xff] }
  0x96   :  { %1842 = vmatpush3.bf16.msra.mxu1 %v1839_v7  ;;  %v380_v57 = vld [vmem:[#allocation10 + $0x18] sm:$0xff]  ;;  %v381_v63 = vld [vmem:[#allocation10 + $0x20] sm:$0xff]  ;;  %v382_v0 = vld [vmem:[#allocation10 + $0x28] sm:$0xff] }
  0x97   :  { %1844 = vmatprep.subr.bf16.mxu1 %v1843_v11  ;;  %v384_v5 = vld [vmem:[#allocation10 + $0x38] sm:$0xff]  ;;  %v385_v8 = vld [vmem:[#allocation10 + $0x40] sm:$0xff]  ;;  %v386_v9 = vld [vmem:[#allocation10 + $0x48] sm:$0xff] }
  0x98   :  { %1786 = vmatpush3.bf16.msra.mxu0 %v1783_v36  ;;  %v616_v36 = vld [vmem:[#allocation12 + $0x48] sm:$0xff]  ;;  %v387_v12 = vld [vmem:[#allocation10 + $0x50] sm:$0xff]  ;;  %v388_v14 = vld [vmem:[#allocation10 + $0x58] sm:$0xff] }
  0x99   :  { %1788 = vmatprep.subr.bf16.mxu0 %v1787_v40  ;;  %v1903_v37 = vpack.c.bf16 %v616_v36, %v615_v35  ;;  %v389_v16 = vld [vmem:[#allocation10 + $0x60] sm:$0xff]  ;;  %v390_v19 = vld [vmem:[#allocation10 + $0x68] sm:$0xff]  ;;  %v754_v26 = vld [vmem:[#allocation13 + $0x90] sm:$0xff] }
  0x9a   :  { %1846 = vmatpush3.bf16.msra.mxu1 %v1843_v11  ;;  %v1871_v11 = vpack.c.bf16 %v386_v9, %v385_v8  ;;  %v752_v23 = vld [vmem:[#allocation13 + $0x80] sm:$0xff]  ;;  %v753_v24 = vld [vmem:[#allocation13 + $0x88] sm:$0xff]  ;;  %v755_v27 = vld [vmem:[#allocation13 + $0x98] sm:$0xff] }
  0x9b   :  { %1848 = vmatprep.subr.bf16.mxu1 %v1847_v15  ;;  %v756_v30 = vld [vmem:[#allocation13 + $0xa0] sm:$0xff]  ;;  %v758_v35 = vld [vmem:[#allocation13 + $0xb0] sm:$0xff]  ;;  %v759_v36 = vld [vmem:[#allocation13 + $0xb8] sm:$0xff] }
  0x9c   :  { %1790 = vmatpush3.bf16.msra.mxu0 %v1787_v40  ;;  %v1907_v40 = vpack.c.bf16 %v618_v39, %v617_v38  ;;  %v760_v38 = vld [vmem:[#allocation13 + $0xc0] sm:$0xff]  ;;  %v761_v39 = vld [vmem:[#allocation13 + $0xc8] sm:$0xff] }
  0x9d   :  { %1792 = vmatprep.subr.bf16.mxu0 %v1791_v43 }
  0x9e   :  { %1850 = vmatpush3.bf16.msra.mxu1 %v1847_v15  ;;  %v1875_v15 = vpack.c.bf16 %v388_v14, %v387_v12 }
  0x9f   :  { %1450 = vmatmul.mubr.f32.vlgmr.msra.gmra.mrb[0].mxu0 %v2457_v13  ;;  %1852 = vmatprep.subr.bf16.mxu1 %v1851_v20 }
  0xa0   :  { %1794 = vmatpush3.bf16.msra.mxu0 %v1791_v43  ;;  %1452 = vmatprep.mubr.f32.mxu0 %v2460_v17  ;;  %v1911_v43 = vpack.c.bf16 %v620_v42, %v619_v41  ;;  %v762_v41 = vld [vmem:[#allocation13 + $0xd0] sm:$0xff]  ;;  %v763_v42 = vld [vmem:[#allocation13 + $0xd8] sm:$0xff] }
  0xa1   :  { %1796 = vmatprep.subr.bf16.mxu0 %v1795_v46 }
  0xa2   :  { %1854 = vmatpush3.bf16.msra.mxu1 %v1851_v20  ;;  %v1879_v20 = vpack.c.bf16 %v390_v19, %v389_v16 }
  0xa3   :  { %1453 = vmatmul.mubr.f32.gmra.mrb[2].mxu0 %v2463_v18 }
  0xa4   :  { %1798 = vmatpush3.bf16.msra.mxu0 %v1795_v46  ;;  %1487 = vmatprep.mubr.f32.mxu0 %v139_v50  ;;  %v1915_v46 = vpack.c.bf16 %v622_v45, %v621_v44  ;;  %v764_v44 = vld [vmem:[#allocation13 + $0xe0] sm:$0xff]  ;;  %v765_v45 = vld [vmem:[#allocation13 + $0xe8] sm:$0xff] }
  0xa5   :  { %1800 = vmatprep.subr.bf16.mxu0 %v1799_v49 }
  0xa8   :  { %1802 = vmatpush3.bf16.msra.mxu0 %v1799_v49 }
  0xa9   :  { %1804 = vmatprep.subr.bf16.mxu0 %v1803_v53 }
  0xac   :  { %1806 = vmatpush3.bf16.msra.mxu0 %v1803_v53 }
  0xad   :  { %1808 = vmatprep.subr.bf16.mxu0 %v1807_v56 }
  0xb0   :  { %1810 = vmatpush3.bf16.msra.mxu0 %v1807_v56  ;;  %v379_v56 = vld [vmem:[#allocation10 + $0x10] sm:$0xff] }
  0xb1   :  { %1812 = vmatprep.subr.bf16.mxu0 %v1811_v59 }
  0xb4   :  { %1814 = vmatpush3.bf16.msra.mxu0 %v1811_v59 }
  0xb5   :  { %1816 = vmatprep.subr.bf16.mxu0 %v1815_v62 }
  0xb8   :  { %1818 = vmatpush3.bf16.msra.mxu0 %v1815_v62  ;;  %v1859_v62 = vpack.c.bf16 %v380_v57, %v379_v56  ;;  %v986_v57 = vld [vmem:[#allocation15 + $0x80] sm:$0xff] }
  0xb9   :  { %1820 = vmatprep.subr.bf16.mxu0 %v1819_v1 }
  0xbc   :  { %1822 = vmatpush3.bf16.msra.mxu0 %v1819_v1 }
  0xbd   :  { %1888 = vmatprep.subr.bf16.mxu0 %v1887_v25 }
  0xbf   :  { %1488 = vmatmul.mubr.f32.vlgmr.msra.gmra.mrb[0].mxu0 %v140_v2 }
  0xc0   :  { %1490 = vmatprep.mubr.f32.mxu0 %v141_v3  ;;  %1890 = vmatpush3.bf16.msra.mxu0 %v1887_v25  ;;  %v1863_v3 = vpack.c.bf16 %v382_v0, %v381_v63  ;;  %v1919_v25 = vpack.c.bf16 %v753_v24, %v752_v23  ;;  %v992_v63 = vld [vmem:[#allocation15 + $0xb0] sm:$0xff]  ;;  %v993_v0 = vld [vmem:[#allocation15 + $0xb8] sm:$0xff] }
  0xc1   :  { %1892 = vmatprep.subr.bf16.mxu0 %v1891_v28 }
  0xc3   :  { %1491 = vmatmul.mubr.f32.gmra.mrb[2].mxu0 %v142_v4  ;;  %v383_v4 = vld [vmem:[#allocation10 + $0x30] sm:$0xff] }
  0xc4   :  { %1601 = vmatprep.mubr.f32.mxu0 %v2453_v10  ;;  %v377_v10 = vld [vmem:[#allocation10] sm:$0xff]  ;;  %1894 = vmatpush3.bf16.msra.mxu0 %v1891_v28  ;;  %v1867_v7 = vpack.c.bf16 %v384_v5, %v383_v4  ;;  %v1923_v28 = vpack.c.bf16 %v755_v27, %v754_v26  ;;  %v1232_v5 = vld [vmem:[#allocation7 + $0x4] ss:$0 sm:$0xff] }
  0xc5   :  { %v2470_v22 = vpack.c.bf16 %v378_v21, %v377_v10  ;;  %1896 = vmatprep.subr.bf16.mxu0 %v1895_v31  ;;  %v391_v10 = vld [vmem:[#allocation10 + $0x70] sm:$0xff]  ;;  %v392_v21 = vld [vmem:[#allocation10 + $0x78] sm:$0xff] }
  0xc7   :  { %1856 = vmatprep.subr.bf16.mxu1 %v2470_v22 }
  0xc8   :  { %1898 = vmatpush3.bf16.msra.mxu0 %v1895_v31  ;;  %v757_v31 = vld [vmem:[#allocation13 + $0xa8] sm:$0xff] }
  0xc9   :  { %1900 = vmatprep.subr.bf16.mxu0 %v1899_v34  ;;  %v1927_v33 = vpack.c.bf16 %v757_v31, %v756_v30 }
  0xcc   :  { %1902 = vmatpush3.bf16.msra.mxu0 %v1899_v34 }
  0xcd   :  { %1904 = vmatprep.subr.bf16.mxu0 %v1903_v37 }
  0xd0   :  { %1906 = vmatpush3.bf16.msra.mxu0 %v1903_v37  ;;  %v1931_v37 = vpack.c.bf16 %v759_v36, %v758_v35 }
  0xd1   :  { %1908 = vmatprep.subr.bf16.mxu0 %v1907_v40 }
  0xd4   :  { %1910 = vmatpush3.bf16.msra.mxu0 %v1907_v40  ;;  %v1935_v40 = vpack.c.bf16 %v761_v39, %v760_v38  ;;  %v737_v38 = vld [vmem:[#allocation13 + $0x28] sm:$0xff] }
  0xd5   :  { %1912 = vmatprep.subr.bf16.mxu0 %v1911_v43 }
  0xd8   :  { %1914 = vmatpush3.bf16.msra.mxu0 %v1911_v43  ;;  %v1939_v43 = vpack.c.bf16 %v763_v42, %v762_v41  ;;  %v738_v42 = vld [vmem:[#allocation13 + $0x30] sm:$0xff] }
  0xd9   :  { %1916 = vmatprep.subr.bf16.mxu0 %v1915_v46 }
  0xdc   :  { %1918 = vmatpush3.bf16.msra.mxu0 %v1915_v46  ;;  %v1943_v46 = vpack.c.bf16 %v765_v45, %v764_v44 }
  0xdf   :  { %1602 = vmatmul.mubr.f32.vlgmr.msra.gmra.mrb[4].mxu0 %v2457_v13 }
  0xe0   :  { %1604 = vmatprep.mubr.f32.mxu0 %v2460_v17 }
  0xe3   :  { %1605 = vmatmul.mubr.f32.gmra.mrb[6].mxu0 %v2463_v18 }
 0x192   :  { %v1489_v49 = vpop.f32.mrb[0].mxu0 }
 0x193   :  { %v354_v50 = vmul.f32 %v1489_v49, %v1228_v47  ;;  %v330_v51 = vpop.f32.mrb[1].mxu0  ;;  %v766_v49 = vld [vmem:[#allocation13 + $0xf0] sm:$0xff] }
 0x194   :  { %v353_v52 = vmul.f32 %v1228_v47, %v330_v51 }
 0x195   :  { %v362_v53 = vadd.f32 %v1229_v48, %v354_v50  ;;  %v767_v50 = vld [vmem:[#allocation13 + $0xf8] sm:$0xff] }
 0x196   :  { %v361_v54 = vadd.f32 %v1229_v48, %v353_v52  ;;  %v1492_v55 = vpop.f32.mrb[2].mxu0  ;;  %v1947_v51 = vpack.c.bf16 %v767_v50, %v766_v49  ;;  %v742_v49 = vld [vmem:[#allocation13 + $0x50] sm:$0xff]  ;;  %v743_v50 = vld [vmem:[#allocation13 + $0x58] sm:$0xff] }
 0x197   :  { %v366_v58 = vmax.f32 %v362_v53, 0.0  ;;  %v356_v59 = vmul.f32 %v1492_v55, %v1228_v47  ;;  %v340_v60 = vpop.f32.mrb[3].mxu0  ;;  %v733_v55 = vld [vmem:[#allocation13 + $0x8] sm:$0xff] }
 0x198   :  { %v365_v61 = vmax.f32 %v361_v54, 0.0  ;;  %v355_v13 = vmul.f32 %v1228_v47, %v340_v60  ;;  %v732_v54 = vld [vmem:[#allocation13] sm:$0xff] }
 0x199   :  { %370 = vst [vmem:[#allocation3 + $0x10] sm:$0xff] %v366_v58  ;;  %v364_v17 = vadd.f32 %v1229_v48, %v356_v59  ;;  %v1951_v56 = vpack.c.bf16 %v733_v55, %v732_v54  ;;  %v988_v59 = vld [vmem:[#allocation15 + $0x90] sm:$0xff] }
 0x19a   :  { %369 = vst [vmem:[#allocation3 + $0x8] sm:$0xff] %v365_v61  ;;  %v363_v18 = vadd.f32 %v1229_v48, %v355_v13  ;;  %1525 = vmatprep.mubr.f32.mxu1 %v365_v61  ;;  %v989_v61 = vld [vmem:[#allocation15 + $0x98] sm:$0xff]  ;;  %v746_v55 = vld [vmem:[#allocation13 + $0x70] sm:$0xff] }
 0x19b   :  { %v368_v1 = vmax.f32 %v364_v17, 0.0  ;;  %1526 = vmatmul.mubr.f32.vlgmr.msra.gmra.mrb[0].mxu1 %v366_v58  ;;  %v987_v58 = vld [vmem:[#allocation15 + $0x88] sm:$0xff]  ;;  %v1987_v13 = vpack.c.bf16 %v989_v61, %v988_v59  ;;  %v990_v17 = vld [vmem:[#allocation15 + $0xa0] sm:$0xff]  ;;  %v968_v61 = vld [vmem:[#allocation15 + $0x10] sm:$0xff] }
 0x19c   :  { %v367_v2 = vmax.f32 %v363_v18, 0.0  ;;  %1858 = vmatpush3.bf16.msra.mxu1 %v2470_v22  ;;  %v1883_v22 = vpack.c.bf16 %v392_v21, %v391_v10  ;;  %v1983_v60 = vpack.c.bf16 %v987_v58, %v986_v57  ;;  %v966_v58 = vld [vmem:[#allocation15] sm:$0xff]  ;;  %v967_v59 = vld [vmem:[#allocation15 + $0x8] sm:$0xff] }
 0x19d   :  { %372 = vst [vmem:[#allocation3 + $0x28] sm:$0xff] %v368_v1  ;;  %1860 = vmatprep.subr.bf16.mxu1 %v1859_v62 }
 0x19e   :  { %371 = vst [vmem:[#allocation3 + $0x20] sm:$0xff] %v367_v2  ;;  %1528 = vmatprep.mubr.f32.mxu1 %v367_v2  ;;  %1984 = vmatprep.subr.bf16.mxu0 %v1983_v60  ;;  %v1230_v2 = vld [vmem:[#allocation7 + $0x2] ss:$0 sm:$0xff] }
 0x19f   :  { %1529 = vmatmul.mubr.f32.gmra.mrb[2].mxu1 %v368_v1  ;;  %1986 = vmatpush3.bf16.msra.mxu0 %v1983_v60  ;;  %v1995_v1 = vpack.c.bf16 %v993_v0, %v992_v63  ;;  %v2493_v60 = vpack.c.bf16 %v967_v59, %v966_v58  ;;  %v971_v63 = vld [vmem:[#allocation15 + $0x28] sm:$0xff] }
 0x1a0   :  { %1862 = vmatpush3.bf16.msra.mxu1 %v1859_v62  ;;  %v991_v62 = vld [vmem:[#allocation15 + $0xa8] sm:$0xff]  ;;  %1988 = vmatprep.subr.bf16.mxu0 %v1987_v13 }
 0x1a1   :  { %v373_v6 = vld [vmem:[#allocation3 + $0x7] sm:$0xff]  ;;  %1864 = vmatprep.subr.bf16.mxu1 %v1863_v3  ;;  %v374_v29 = vld [vmem:[#allocation3 + $0xf] sm:$0xff]  ;;  %v1991_v18 = vpack.c.bf16 %v991_v62, %v990_v17 }
 0x1a2   :  { %1563 = vmatprep.mubr.f32.mxu1 %v373_v6 }
 0x1a3   :  { %1990 = vmatpush3.bf16.msra.mxu0 %v1987_v13  ;;  %v969_v13 = vld [vmem:[#allocation15 + $0x18] sm:$0xff] }
 0x1a4   :  { %1866 = vmatpush3.bf16.msra.mxu1 %v1863_v3  ;;  %1992 = vmatprep.subr.bf16.mxu0 %v1991_v18  ;;  %v1231_v3 = vld [vmem:[#allocation7 + $0x3] ss:$0 sm:$0xff]  ;;  %v2496_v17 = vpack.c.bf16 %v969_v13, %v968_v61  ;;  %v1235_v61 = vld [vmem:[#allocation7 + $0x7] ss:$0 sm:$0xff] }
 0x1a5   :  { %1868 = vmatprep.subr.bf16.mxu1 %v1867_v7  ;;  %v375_v32 = vld [vmem:[#allocation3 + $0x1f] sm:$0xff]  ;;  %v376_v34 = vld [vmem:[#allocation3 + $0x27] sm:$0xff] }
 0x1a7   :  { %1994 = vmatpush3.bf16.msra.mxu0 %v1991_v18  ;;  %v970_v18 = vld [vmem:[#allocation15 + $0x20] sm:$0xff] }
 0x1a8   :  { %1870 = vmatpush3.bf16.msra.mxu1 %v1867_v7  ;;  %1996 = vmatprep.subr.bf16.mxu0 %v1995_v1 }
 0x1a9   :  { %1872 = vmatprep.subr.bf16.mxu1 %v1871_v11 }
 0x1ab   :  { %1998 = vmatpush3.bf16.msra.mxu0 %v1995_v1  ;;  %v2500_v1 = vpack.c.bf16 %v971_v63, %v970_v18  ;;  %v1236_v18 = vld [vmem:[#allocation7 + $0x8] ss:$0 sm:$0xff] }
 0x1ac   :  { %1874 = vmatpush3.bf16.msra.mxu1 %v1871_v11 }
 0x1ad   :  { %1876 = vmatprep.subr.bf16.mxu1 %v1875_v15 }
 0x1b0   :  { %1878 = vmatpush3.bf16.msra.mxu1 %v1875_v15 }
 0x1b1   :  { %1880 = vmatprep.subr.bf16.mxu1 %v1879_v20 }
 0x1b2   :  { %v1603_v47 = vpop.f32.mrb[4].mxu0 }
 0x1b3   :  { %v693_v48 = vpop.f32.mrb[5].mxu0  ;;  %v699_v11 = vadd.f32 %v1603_v47, %v1232_v5  ;;  %v741_v47 = vld [vmem:[#allocation13 + $0x48] sm:$0xff] }
 0x1b4   :  { %1882 = vmatpush3.bf16.msra.mxu1 %v1879_v20  ;;  %v694_v15 = vadd.f32 %v1232_v5, %v693_v48 }
 0x1b5   :  { %1884 = vmatprep.subr.bf16.mxu1 %v1883_v22 }
 0x1b6   :  { %v1606_v52 = vpop.f32.mrb[6].mxu0 }
 0x1b7   :  { %v703_v53 = vpop.f32.mrb[7].mxu0  ;;  %v709_v24 = vadd.f32 %v1606_v52, %v1232_v5  ;;  %v744_v52 = vld [vmem:[#allocation13 + $0x60] sm:$0xff] }
 0x1b8   :  { %1886 = vmatpush3.bf16.msra.mxu1 %v1883_v22  ;;  %v704_v27 = vadd.f32 %v1232_v5, %v703_v53  ;;  %v745_v53 = vld [vmem:[#allocation13 + $0x68] sm:$0xff] }
 0x1b9   :  { %1920 = vmatprep.subr.bf16.mxu1 %v1919_v25  ;;  %v1975_v54 = vpack.c.bf16 %v745_v53, %v744_v52 }
 0x1bb   :  { %1564 = vmatmul.mubr.f32.vlgmr.msra.gmra.mrb[0].mxu1 %v374_v29  ;;  %v735_v29 = vld [vmem:[#allocation13 + $0x18] sm:$0xff] }
 0x1bc   :  { %1566 = vmatprep.mubr.f32.mxu1 %v375_v32  ;;  %1922 = vmatpush3.bf16.msra.mxu1 %v1919_v25 }
 0x1bd   :  { %1924 = vmatprep.subr.bf16.mxu1 %v1923_v28 }
 0x1bf   :  { %1567 = vmatmul.mubr.f32.gmra.mrb[2].mxu1 %v376_v34 }
 0x1c0   :  { %1926 = vmatpush3.bf16.msra.mxu1 %v1923_v28  ;;  %v734_v28 = vld [vmem:[#allocation13 + $0x10] sm:$0xff] }
 0x1c1   :  { %1928 = vmatprep.subr.bf16.mxu1 %v1927_v33  ;;  %v1955_v35 = vpack.c.bf16 %v735_v29, %v734_v28  ;;  %v979_v28 = vld [vmem:[#allocation15 + $0x68] sm:$0xff] }
 0x1c4   :  { %1930 = vmatpush3.bf16.msra.mxu1 %v1927_v33 }
 0x1c5   :  { %1932 = vmatprep.subr.bf16.mxu1 %v1931_v37 }
 0x1c8   :  { %1934 = vmatpush3.bf16.msra.mxu1 %v1931_v37  ;;  %v736_v37 = vld [vmem:[#allocation13 + $0x20] sm:$0xff] }
 0x1c9   :  { %1936 = vmatprep.subr.bf16.mxu1 %v1935_v40  ;;  %v1959_v41 = vpack.c.bf16 %v737_v38, %v736_v37 }
 0x1cc   :  { %1938 = vmatpush3.bf16.msra.mxu1 %v1935_v40 }
 0x1cd   :  { %1940 = vmatprep.subr.bf16.mxu1 %v1939_v43 }
 0x1d0   :  { %1942 = vmatpush3.bf16.msra.mxu1 %v1939_v43  ;;  %v739_v43 = vld [vmem:[#allocation13 + $0x38] sm:$0xff] }
 0x1d1   :  { %1944 = vmatprep.subr.bf16.mxu1 %v1943_v46  ;;  %v1963_v45 = vpack.c.bf16 %v739_v43, %v738_v42 }
 0x1d4   :  { %1946 = vmatpush3.bf16.msra.mxu1 %v1943_v46  ;;  %v740_v46 = vld [vmem:[#allocation13 + $0x40] sm:$0xff] }
 0x1d5   :  { %1948 = vmatprep.subr.bf16.mxu1 %v1947_v51  ;;  %v1967_v48 = vpack.c.bf16 %v741_v47, %v740_v46 }
 0x1d8   :  { %1950 = vmatpush3.bf16.msra.mxu1 %v1947_v51  ;;  %v1971_v51 = vpack.c.bf16 %v743_v50, %v742_v49 }
 0x1d9   :  { %1952 = vmatprep.subr.bf16.mxu1 %v1951_v56 }
 0x28e   :  { %v1565_v4 = vpop.f32.mrb[0].mxu1 }
 0x28f   :  { %v588_v6 = vmul.f32 %v1565_v4, %v1230_v2  ;;  %v564_v7 = vpop.f32.mrb[1].mxu1  ;;  %v995_v4 = vld [vmem:[#allocation15 + $0xc8] sm:$0xff] }
 0x290   :  { %v587_v8 = vmul.f32 %v1230_v2, %v564_v7  ;;  %v997_v7 = vld [vmem:[#allocation15 + $0xd8] sm:$0xff] }
 0x291   :  { %v596_v9 = vadd.f32 %v1231_v3, %v588_v6  ;;  %v996_v6 = vld [vmem:[#allocation15 + $0xd0] sm:$0xff] }
 0x292   :  { %v595_v12 = vadd.f32 %v1231_v3, %v587_v8  ;;  %v1568_v14 = vpop.f32.mrb[2].mxu1  ;;  %v2003_v8 = vpack.c.bf16 %v997_v7, %v996_v6 }
 0x293   :  { %v600_v16 = vmax.f32 %v596_v9, 0.0  ;;  %v590_v19 = vmul.f32 %v1568_v14, %v1230_v2  ;;  %v574_v20 = vpop.f32.mrb[3].mxu1  ;;  %v998_v9 = vld [vmem:[#allocation15 + $0xe0] sm:$0xff]  ;;  %v973_v14 = vld [vmem:[#allocation15 + $0x38] sm:$0xff] }
 0x294   :  { %v599_v10 = vmax.f32 %v595_v12, 0.0  ;;  %v589_v21 = vmul.f32 %v1230_v2, %v574_v20  ;;  %v972_v12 = vld [vmem:[#allocation15 + $0x30] sm:$0xff]  ;;  %v1001_v20 = vld [vmem:[#allocation15 + $0xf8] sm:$0xff] }
 0x295   :  { %v713_v22 = vadd.f32 %v699_v11, %v600_v16  ;;  %v598_v23 = vadd.f32 %v1231_v3, %v590_v19  ;;  %v999_v11 = vld [vmem:[#allocation15 + $0xe8] sm:$0xff]  ;;  %v2505_v16 = vpack.c.bf16 %v973_v14, %v972_v12  ;;  %v1000_v19 = vld [vmem:[#allocation15 + $0xf0] sm:$0xff] }
 0x296   :  { %v712_v25 = vadd.f32 %v694_v15, %v599_v10  ;;  %v597_v26 = vadd.f32 %v1231_v3, %v589_v21  ;;  %v994_v3 = vld [vmem:[#allocation15 + $0xc0] sm:$0xff]  ;;  %v2007_v15 = vpack.c.bf16 %v999_v11, %v998_v9  ;;  %v975_v21 = vld [vmem:[#allocation15 + $0x48] sm:$0xff] }
 0x297   :  { %v2477_v30 = vmax.f32 %v713_v22, 0.0  ;;  %v602_v31 = vmax.f32 %v598_v23, 0.0  ;;  %v1999_v5 = vpack.c.bf16 %v995_v4, %v994_v3  ;;  %v974_v10 = vld [vmem:[#allocation15 + $0x40] sm:$0xff]  ;;  %v2011_v22 = vpack.c.bf16 %v1001_v20, %v1000_v19 }
 0x298   :  { %v2479_v32 = vmax.f32 %v712_v25, 0.0  ;;  %v601_v33 = vmax.f32 %v597_v26, 0.0  ;;  %v2031_v23 = vpack.c.bf16 %v975_v21, %v974_v10  ;;  %v977_v25 = vld [vmem:[#allocation15 + $0x58] sm:$0xff] }
 0x299   :  { %721 = vst [vmem:[#allocation2 + $0x10] sm:$0xff] %v2477_v30  ;;  %v715_v34 = vadd.f32 %v709_v24, %v602_v31  ;;  %2000 = vmatprep.subr.bf16.mxu0 %v1999_v5  ;;  %v976_v24 = vld [vmem:[#allocation15 + $0x50] sm:$0xff] }
 0x29a   :  { %720 = vst [vmem:[#allocation2 + $0x8] sm:$0xff] %v2479_v32  ;;  %v714_v36 = vadd.f32 %v704_v27, %v601_v33  ;;  %1639 = vmatprep.mubr.f32.mxu1 %v2479_v32  ;;  %2002 = vmatpush3.bf16.msra.mxu0 %v1999_v5  ;;  %v2035_v26 = vpack.c.bf16 %v977_v25, %v976_v24  ;;  %v978_v27 = vld [vmem:[#allocation15 + $0x60] sm:$0xff]  ;;  %v980_v31 = vld [vmem:[#allocation15 + $0x70] sm:$0xff]  ;;  %v981_v33 = vld [vmem:[#allocation15 + $0x78] sm:$0xff] }
 0x29b   :  { %v2484_v39 = vmax.f32 %v715_v34, 0.0  ;;  %1640 = vmatmul.mubr.f32.vlgmr.msra.gmra.mrb[4].mxu1 %v2477_v30  ;;  %2004 = vmatprep.subr.bf16.mxu0 %v2003_v8  ;;  %v2039_v29 = vpack.c.bf16 %v979_v28, %v978_v27  ;;  %v2043_v34 = vpack.c.bf16 %v981_v33, %v980_v31 }
 0x29c   :  { %v2487_v40 = vmax.f32 %v714_v36, 0.0  ;;  %1954 = vmatpush3.bf16.msra.mxu1 %v1951_v56  ;;  %v747_v56 = vld [vmem:[#allocation13 + $0x78] sm:$0xff]  ;;  %v1234_v36 = vld [vmem:[#allocation7 + $0x6] ss:$0 sm:$0xff] }
 0x29d   :  { %723 = vst [vmem:[#allocation2 + $0x28] sm:$0xff] %v2484_v39  ;;  %1956 = vmatprep.subr.bf16.mxu1 %v1955_v35  ;;  %v1979_v57 = vpack.c.bf16 %v747_v56, %v746_v55 }
 0x29e   :  { %722 = vst [vmem:[#allocation2 + $0x20] sm:$0xff] %v2487_v40  ;;  %1642 = vmatprep.mubr.f32.mxu1 %v2487_v40  ;;  %2006 = vmatpush3.bf16.msra.mxu0 %v2003_v8 }
 0x29f   :  { %1643 = vmatmul.mubr.f32.gmra.mrb[6].mxu1 %v2484_v39  ;;  %2008 = vmatprep.subr.bf16.mxu0 %v2007_v15 }
 0x2a0   :  { %1958 = vmatpush3.bf16.msra.mxu1 %v1955_v35  ;;  %v1233_v35 = vld [vmem:[#allocation7 + $0x5] ss:$0 sm:$0xff] }
 0x2a1   :  { %v728_v44 = vld [vmem:[#allocation2 + $0x6] sm:$0xff]  ;;  %1960 = vmatprep.subr.bf16.mxu1 %v1959_v41  ;;  %v729_v62 = vld [vmem:[#allocation2 + $0xe] sm:$0xff] }
 0x2a2   :  { %1677 = vmatprep.mubr.f32.mxu1 %v728_v44  ;;  %2010 = vmatpush3.bf16.msra.mxu0 %v2007_v15 }
 0x2a3   :  { %2012 = vmatprep.subr.bf16.mxu0 %v2011_v22 }
 0x2a4   :  { %1962 = vmatpush3.bf16.msra.mxu1 %v1959_v41 }
 0x2a5   :  { %1964 = vmatprep.subr.bf16.mxu1 %v1963_v45  ;;  %v730_v0 = vld [vmem:[#allocation2 + $0x1e] sm:$0xff]  ;;  %v731_v2 = vld [vmem:[#allocation2 + $0x26] sm:$0xff] }
 0x2a6   :  { %2014 = vmatpush3.bf16.msra.mxu0 %v2011_v22 }
 0x2a7   :  { %2016 = vmatprep.subr.bf16.mxu0 %v2493_v60 }
 0x2a8   :  { %1966 = vmatpush3.bf16.msra.mxu1 %v1963_v45 }
 0x2a9   :  { %1968 = vmatprep.subr.bf16.mxu1 %v1967_v48 }
 0x2ac   :  { %1970 = vmatpush3.bf16.msra.mxu1 %v1967_v48 }
 0x2ad   :  { %1972 = vmatprep.subr.bf16.mxu1 %v1971_v51 }
 0x2b0   :  { %1974 = vmatpush3.bf16.msra.mxu1 %v1971_v51 }
 0x2b1   :  { %1976 = vmatprep.subr.bf16.mxu1 %v1975_v54 }
 0x2b4   :  { %1978 = vmatpush3.bf16.msra.mxu1 %v1975_v54 }
 0x2b5   :  { %1980 = vmatprep.subr.bf16.mxu1 %v1979_v57 }
 0x2b8   :  { %1982 = vmatpush3.bf16.msra.mxu1 %v1979_v57 }
 0x2b9   :  { %2047 = vmatprep.subr.bf16.mxu1 %v2493_v60 }
 0x2bb   :  { %1678 = vmatmul.mubr.f32.vlgmr.msra.gmra.mrb[4].mxu1 %v729_v62 }
 0x2bc   :  { %1680 = vmatprep.mubr.f32.mxu1 %v730_v0  ;;  %2055 = vmatpush3.bf16.msra.mxu1 %v2493_v60 }
 0x2bd   :  { %2048 = vmatprep.subr.bf16.mxu1 %v2496_v17 }
 0x2bf   :  { %1681 = vmatmul.mubr.f32.gmra.mrb[6].mxu1 %v731_v2 }
 0x2c0   :  { %2056 = vmatpush3.bf16.msra.mxu1 %v2496_v17 }
 0x2c1   :  { %2049 = vmatprep.subr.bf16.mxu1 %v2500_v1 }
 0x2c4   :  { %2057 = vmatpush3.bf16.msra.mxu1 %v2500_v1 }
 0x2c5   :  { %2050 = vmatprep.subr.bf16.mxu1 %v2505_v16 }
 0x2c8   :  { %2058 = vmatpush3.bf16.msra.mxu1 %v2505_v16 }
 0x2c9   :  { %2051 = vmatprep.subr.bf16.mxu1 %v2031_v23 }
 0x2cc   :  { %2059 = vmatpush3.bf16.msra.mxu1 %v2031_v23 }
 0x2cd   :  { %2052 = vmatprep.subr.bf16.mxu1 %v2035_v26 }
 0x2d0   :  { %2060 = vmatpush3.bf16.msra.mxu1 %v2035_v26 }
 0x2d1   :  { %2053 = vmatprep.subr.bf16.mxu1 %v2039_v29 }
 0x2d4   :  { %2061 = vmatpush3.bf16.msra.mxu1 %v2039_v29 }
 0x2d5   :  { %2054 = vmatprep.subr.bf16.mxu1 %v2043_v34 }
 0x2d8   :  { %2062 = vmatpush3.bf16.msra.mxu1 %v2043_v34 }
 0x38e   :  { %v1679_v37 = vpop.f32.mrb[4].mxu1 }
 0x38f   :  { %v943_v38 = vmul.f32 %v1679_v37, %v1233_v35  ;;  %v919_v41 = vpop.f32.mrb[5].mxu1 }
 0x390   :  { %v942_v42 = vmul.f32 %v1233_v35, %v919_v41 }
 0x391   :  { %v951_v43 = vadd.f32 %v1234_v36, %v943_v38 }
 0x392   :  { %v950_v44 = vadd.f32 %v1234_v36, %v942_v42  ;;  %v1682_v45 = vpop.f32.mrb[6].mxu1 }
 0x393   :  { %v955_v46 = vmax.f32 %v951_v43, 0.0  ;;  %v945_v47 = vmul.f32 %v1682_v45, %v1233_v35  ;;  %v929_v48 = vpop.f32.mrb[7].mxu1 }
 0x394   :  { %v954_v49 = vmax.f32 %v950_v44, 0.0  ;;  %v944_v50 = vmul.f32 %v1233_v35, %v929_v48 }
 0x395   :  { %959 = vst [vmem:[#allocation3 + $0x10] sm:$0xff] %v955_v46  ;;  %v953_v51 = vadd.f32 %v1234_v36, %v945_v47 }
 0x396   :  { %958 = vst [vmem:[#allocation3 + $0x8] sm:$0xff] %v954_v49  ;;  %v952_v52 = vadd.f32 %v1234_v36, %v944_v50  ;;  %1715 = vmatprep.mubr.f32.mxu0 %v954_v49 }
 0x397   :  { %v957_v53 = vmax.f32 %v953_v51, 0.0  ;;  %1716 = vmatmul.mubr.f32.vlgmr.msra.gmra.mrb[8].mxu0 %v955_v46 }
 0x398   :  { %v956_v54 = vmax.f32 %v952_v52, 0.0  ;;  %2018 = vmatpush3.bf16.msra.mxu0 %v2493_v60 }
 0x399   :  { %961 = vst [vmem:[#allocation3 + $0x28] sm:$0xff] %v957_v53  ;;  %2020 = vmatprep.subr.bf16.mxu0 %v2496_v17 }
 0x39a   :  { %960 = vst [vmem:[#allocation3 + $0x20] sm:$0xff] %v956_v54  ;;  %1718 = vmatprep.mubr.f32.mxu0 %v956_v54 }
 0x39b   :  { %1719 = vmatmul.mubr.f32.gmra.mrb[10].mxu0 %v957_v53 }
 0x39c   :  { %2022 = vmatpush3.bf16.msra.mxu0 %v2496_v17 }
 0x39d   :  { %v962_v55 = vld [vmem:[#allocation3 + $0x6] sm:$0xff]  ;;  %2024 = vmatprep.subr.bf16.mxu0 %v2500_v1  ;;  %v963_v58 = vld [vmem:[#allocation3 + $0xe] sm:$0xff] }
 0x39e   :  { %1753 = vmatprep.mubr.f32.mxu0 %v962_v55 }
 0x3a0   :  { %2026 = vmatpush3.bf16.msra.mxu0 %v2500_v1 }
 0x3a1   :  { %v964_v56 = vld [vmem:[#allocation3 + $0x1e] sm:$0xff]  ;;  %v965_v57 = vld [vmem:[#allocation3 + $0x26] sm:$0xff]  ;;  %2028 = vmatprep.subr.bf16.mxu0 %v2505_v16 }
 0x3a2   :  { %1756 = vmatprep.mubr.f32.mxu1 %v964_v56 }
 0x3a3   :  { %1757 = vmatmul.mubr.f32.vlgmr.msra.gmra.mrb[8].mxu1 %v965_v57 }
 0x3a4   :  { %2030 = vmatpush3.bf16.msra.mxu0 %v2505_v16 }
 0x3a5   :  { %2032 = vmatprep.subr.bf16.mxu0 %v2031_v23 }
 0x3a8   :  { %2034 = vmatpush3.bf16.msra.mxu0 %v2031_v23 }
 0x3a9   :  { %2036 = vmatprep.subr.bf16.mxu0 %v2035_v26 }
 0x3ac   :  { %2038 = vmatpush3.bf16.msra.mxu0 %v2035_v26 }
 0x3ad   :  { %2040 = vmatprep.subr.bf16.mxu0 %v2039_v29 }
 0x3b0   :  { %2042 = vmatpush3.bf16.msra.mxu0 %v2039_v29 }
 0x3b1   :  { %2044 = vmatprep.subr.bf16.mxu0 %v2043_v34 }
 0x3b4   :  { %2046 = vmatpush3.bf16.msra.mxu0 %v2043_v34 }
 0x3b7   :  { %1754 = vmatmul.mubr.f32.vlgmr.msra.gmra.mrb[8].mxu0 %v963_v58 }
 0x46e   :  { %v1720_v59 = vpop.f32.mrb[10].mxu0 }
 0x46f   :  { %v1078_v60 = vpop.f32.mrb[11].mxu0 }
 0x476   :  { %v1758_v13 = vpop.f32.mrb[8].mxu1 }
 0x477   :  { %v1169_v17 = vadd.f32 %v1758_v13, %v1720_v59  ;;  %v1163_v62 = vpop.f32.mrb[9].mxu1 }
 0x478   :  { %v1164_v63 = vadd.f32 %v1163_v62, %v1078_v60 }
 0x479   :  { %v1179_v0 = vmul.f32 %v1235_v61, %v1169_v17 }
 0x47a   :  { %v1178_v1 = vmul.f32 %v1235_v61, %v1164_v63 }
 0x47b   :  { %v1187_v2 = vadd.f32 %v1236_v18, %v1179_v0 }
 0x47c   :  { %v1186_v3 = vadd.f32 %v1236_v18, %v1178_v1 }
 0x47d   :  { %v1191_v4 = vmax.f32 %v1187_v2, 0.0 }
 0x47e   :  { %v1190_v5 = vmax.f32 %v1186_v3, 0.0 }
 0x47f   :  { %v1199_v6 = vadd.f32 %v1191_v4, %v2484_v39 }
 0x480   :  { %v1198_v7 = vadd.f32 %v1190_v5, %v2487_v40 }
 0x481   :  { %v1203_v8 = vmax.f32 %v1199_v6, 0.0 }
 0x482   :  { %v1202_v9 = vmax.f32 %v1198_v7, 0.0 }
 0x483   :  { %1207 = vst [vmem:[#allocation16 + $0x18] sm:$0xff] %v1203_v8 }
 0x484   :  { %1206 = vst [vmem:[#allocation16 + $0x10] sm:$0xff] %v1202_v9 }
 0x48a   :  { %v1755_v11 = vpop.f32.mrb[8].mxu0 }
 0x48b   :  { %v1177_v12 = vmul.f32 %v1755_v11, %v1235_v61  ;;  %v1153_v14 = vpop.f32.mrb[9].mxu0 }
 0x48c   :  { %v1176_v15 = vmul.f32 %v1235_v61, %v1153_v14 }
 0x48d   :  { %v1185_v16 = vadd.f32 %v1236_v18, %v1177_v12 }
 0x48e   :  { %v1184_v19 = vadd.f32 %v1236_v18, %v1176_v15 }
 0x48f   :  { %v1189_v20 = vmax.f32 %v1185_v16, 0.0 }
 0x490   :  { %v1188_v10 = vmax.f32 %v1184_v19, 0.0 }
 0x491   :  { %v1197_v21 = vadd.f32 %v1189_v20, %v2477_v30 }
 0x492   :  { %v1196_v39 = vadd.f32 %v1188_v10, %v2479_v32 }
 0x493   :  { %v1201_v22 = vmax.f32 %v1197_v21, 0.0 }
 0x494   :  { %v1200_v40 = vmax.f32 %v1196_v39, 0.0 }
 0x495   :  { %1205 = vst [vmem:[#allocation16 + $0x8] sm:$0xff] %v1201_v22 }
 0x496   :  { %1204 = vst [vmem:[#allocation16] sm:$0xff] %v1200_v40 }
 0x497   :  { %2255 = shalt.err (!%p2252_p4)
}
 0x498   :  { %s2256_s27 = scalar_lea.hbm %s2543_s7, 512 }
 0x499   :  { %p2257_p5 = scmp.ne.s32.totalorder %s2543_s7, %s2256_s27  ;;  %p2260_p6 = scmp.lt.u32.totalorder %s2256_s27, %s2543_s7 }
 0x49b   :  { %p2262_p7 = pnand %p2260_p6, %p2257_p5 }
 0x49d   :  { %2265 = shalt.err (!%p2262_p7)
}
 0x49e   :  { %1219 = dma.vmem_to_hbm [thread:$0]  %s1214_s16, 512, %s2543_s7, [#allocation6], %s2278_s13, %s2278_s13, %s2279_s14  }
 0x49f   :  { %2274 = dma.done.wait [#allocation6], 512  }
 0x4a0   :  { %2275 = vsyncadd [#allocation6], 4294966784 }
 0x4a1   :  { %1223 = vsyncpa [#allocation5], 1 }
 0x4a2   :  { %1224 = vsyncpa [#allocation8], 1 }
 0x4a3   :  { %1225 = vsyncpa [#allocation11], 1 }
 0x4a4   :  { %1226 = vsyncpa [#allocation14], 1 }
 0x4a5   :  { %1227 = vsyncpa [#allocation6], 1 }

</bundles_post_ra>
